<compile_context>
chip_gen: v5e
topology: v5e:2x2
jax: 0.10.0
libtpu: 0.0.40
codegen_flags: <defaults>
</compile_context>

<pallas_src>
import functools

import jax
import jax.numpy as jnp
from jax import lax
from jax.experimental import pallas as pl
from jax.experimental.pallas import tpu as pltpu


def gnn_kernel(adj_hbm, x_ref, w1_ref, b1_ref, w2_ref, b2_ref, alpha_ref,
               out_ref, adj_vmem, adj_sem, *, t_final, num_steps,
               use_propagator, matmul_dtype):
    # Kick off the big (N,N) adj HBM->VMEM DMA first and overlap it with the prologue.
    adj_copy = pltpu.make_async_copy(adj_hbm, adj_vmem, adj_sem)
    adj_copy.start()

    def mm(a, b):
        # MXU matmul with f32 accumulation; operands optionally cast (bf16 on v6e/v7x).
        return jnp.dot(a.astype(matmul_dtype), b.astype(matmul_dtype),
                       preferred_element_type=jnp.float32)

    # --- work that does not need adj: x @ W1 and the per-node coefficient ---
    xw = mm(x_ref[...], w1_ref[...])                              # (Np, Hp)
    alpha = alpha_ref[...]                                        # (Np, 1)
    coef = 0.6 * jnp.where(alpha >= 0.0, alpha, 0.01 * alpha)     # leaky_relu; 0 on padded rows

    adj_copy.wait()
    adj = adj_vmem[...]                                           # (Np, Np); padded rows/cols = 0

    # --- GCNConv1: adj @ (x @ W1) + b1 ---
    h1 = mm(adj, xw) + b1_ref[...]                                # (Np, Hp)

    # Reduced ODE state: the zero auxiliary half of the original concat stays identically
    # zero under the linear dynamics, so only the (N, H) half is integrated.
    x0 = h1

    dt = jnp.float32(t_final / num_steps)

    if use_propagator:
        # Exact RK4 step for the linear ODE y' = A y + x0, A = coef * (adj - I):
        #   y_{n+1} = y_n + Phi' @ y_n + c
        #   Phi' = dt*A + dt^2/2*A^2 + dt^3/6*A^3 + dt^4/24*A^4          (= Phi - I)
        #   c    = (dt*I + dt^2/2*A + dt^3/6*A^2 + dt^4/24*A^3) @ x0
        # One-time ~3 (N,N)@(N,N) matmuls replace 4 (N,N)@(N,Hp) matmuls per step.
        # The iota-built identity is used only on this path, where its O(N^2) VALU cost
        # is negligible next to the O(N^3) propagator build (path is only taken when
        # N_pad <= 10 * H_pad and everything fits VMEM).
        n_p = adj.shape[0]
        row = lax.broadcasted_iota(jnp.int32, (n_p, n_p), 0)
        col = lax.broadcasted_iota(jnp.int32, (n_p, n_p), 1)
        a_mat = coef * (adj - (row == col).astype(jnp.float32))   # (Np, Np); padded rows/cols 0

        g = (dt / 4.0) * a_mat
        g = (dt / 3.0) * (a_mat + mm(a_mat, g))
        g = (dt / 2.0) * (a_mat + mm(a_mat, g))                   # dt/2*A + dt^2/6*A^2 + dt^3/24*A^3
        c = dt * (x0 + mm(g, x0))                                 # Psi @ x0
        phi = dt * (a_mat + mm(a_mat, g))                         # Phi - I

        def prop_step(_, y):
            return y + mm(phi, y) + c

        z = lax.fori_loop(0, num_steps, prop_step, x0)            # (Np, Hp)
    else:
        # Direct path: only adj is resident (no eye, no second (N,N) matrix); the two
        # extra (N,Hp) VPU ops per stage hide under the (N,N)@(N,Hp) MXU matmul.
        half_dt = 0.5 * dt
        sixth_dt = dt / 6.0

        def f(y):
            # f(y) = coef * (adj @ y - y) + x0
            return coef * (mm(adj, y) - y) + x0

        def rk4_step(_, y):
            k1 = f(y)
            k2 = f(y + half_dt * k1)
            k3 = f(y + half_dt * k2)
            k4 = f(y + dt * k3)
            return y + sixth_dt * (k1 + 2.0 * (k2 + k3) + k4)

        # No full unroll: the 4 stage matmuls are serially dependent on the MXU, so
        # unrolling only multiplies live (N,Hp) temporaries (per review).
        z = lax.fori_loop(0, num_steps, rk4_step, x0)             # (Np, Hp)

    # --- relu (already only the "first half" of the original state) ---
    z = jnp.maximum(z, 0.0)

    # --- GCNConv2: adj @ (z @ W2) + b2 ---
    out_ref[...] = mm(adj, mm(z, w2_ref[...])) + b2_ref[...]


def _round_up(v, m):
    return ((v + m - 1) // m) * m


def _vmem_cap_bytes():
    # Generation-aware ceiling: physical VMEM minus ~8 MiB headroom for Mosaic scratch
    # (~120 MiB on v5e/v6e, ~56 MiB on v7x).  Conservative fallback if the query fails.
    try:
        info = pltpu.get_tpu_info()
        cap = getattr(info, "vmem_capacity_bytes", None)
        if cap:
            return max(int(cap) - (8 << 20), 32 << 20)
    except Exception:
        pass
    return 56 << 20


def custom_gnn_forward(adj, x, w1, b1, w2, b2, alpha, *, t_final=1.0, num_steps=10,
                       ode_mode="auto", matmul_dtype=jnp.float32):
    """ode_mode: "auto" | "propagator" | "direct".
    matmul_dtype: jnp.float32 (default, reference-exact) or jnp.bfloat16
    (v6e/v7x MXU-native; loosens accuracy -- see review)."""
    n, f_in = x.shape
    hidden = w1.shape[1]
    num_class = w2.shape[1]

    # Lane-pad ALL axes (including the node axis N) to multiples of 128.  Zero padding is
    # exact: padded adj rows/cols and alpha are 0, so padded rows never leak into kept rows.
    n_p = _round_up(n, 128)
    f_p = _round_up(f_in, 128)
    h_p = _round_up(hidden, 128)
    c_p = _round_up(num_class, 128)

    adj_p = jnp.pad(adj, ((0, n_p - n), (0, n_p - n)))
    x_p = jnp.pad(x, ((0, n_p - n), (0, f_p - f_in)))
    w1_p = jnp.pad(w1, ((0, f_p - f_in), (0, h_p - hidden)))
    b1_p = jnp.pad(b1, ((0, 0), (0, h_p - hidden)))
    w2_p = jnp.pad(w2, ((0, h_p - hidden), (0, c_p - num_class)))
    b2_p = jnp.pad(b2, ((0, 0), (0, c_p - num_class)))
    alpha_p = jnp.pad(alpha, ((0, n_p - n), (0, 0)))

    cap = _vmem_cap_bytes()
    nsq = n_p * n_p
    common = (n_p * f_p + 12 * n_p * h_p + f_p * h_p + h_p * c_p
              + 2 * n_p * c_p + 2 * n_p)
    est_direct = 4 * (nsq + common)        # adj + states/weights
    est_prop = 4 * (4 * nsq + common)      # adj + A + G + Phi' (transient) + states

    if ode_mode == "propagator":
        use_propagator = True
    elif ode_mode == "direct":
        use_propagator = False
    else:
        # Propagator wins when the one-time O(N^3) build is small relative to the
        # 4*num_steps (N,N)@(N,Hp) stage matmuls it replaces, and it fits VMEM.
        use_propagator = (n_p <= 10 * h_p) and (2 * est_prop <= cap)

    est = est_prop if use_propagator else est_direct
    vmem_limit = int(min(max(2 * est, 32 << 20), cap))

    kernel = functools.partial(gnn_kernel,
                               t_final=float(t_final), num_steps=int(num_steps),
                               use_propagator=use_propagator, matmul_dtype=matmul_dtype)

    out_p = pl.pallas_call(
        kernel,
        out_shape=jax.ShapeDtypeStruct((n_p, c_p), jnp.float32),
        in_specs=[
            pl.BlockSpec(memory_space=pl.ANY),                   # adj: manual, overlapped DMA
            pl.BlockSpec(memory_space=pltpu.MemorySpace.VMEM),   # x
            pl.BlockSpec(memory_space=pltpu.MemorySpace.VMEM),   # w1
            pl.BlockSpec(memory_space=pltpu.MemorySpace.VMEM),   # b1
            pl.BlockSpec(memory_space=pltpu.MemorySpace.VMEM),   # w2
            pl.BlockSpec(memory_space=pltpu.MemorySpace.VMEM),   # b2
            pl.BlockSpec(memory_space=pltpu.MemorySpace.VMEM),   # alpha
        ],
        out_specs=pl.BlockSpec(memory_space=pltpu.MemorySpace.VMEM),
        scratch_shapes=[
            pltpu.VMEM((n_p, n_p), jnp.float32),                 # adj landing buffer
            pltpu.SemaphoreType.DMA,                             # adj DMA completion sem
        ],
        compiler_params=pltpu.CompilerParams(vmem_limit_bytes=vmem_limit),
    )(adj_p, x_p, w1_p, b1_p, w2_p, b2_p, alpha_p)

    return out_p[:n, :num_class]


def reference_forward(adj, x, w1, b1, w2, b2, alpha, *, t_final=1.0, num_steps=10):
    """Pure-JAX reference in the ORIGINAL (unoptimized) formulation: zero auxiliary
    channels, coef*(adj@y - y) + x0, slice + relu + conv2, fixed-step RK4."""
    h1 = adj @ (x @ w1) + b1
    x0 = jnp.concatenate([h1, jnp.zeros_like(h1)], axis=1)
    coef = 0.6 * jnp.where(alpha >= 0.0, alpha, 0.01 * alpha)

    def f(y):
        return coef * (adj @ y - y) + x0

    dt = t_final / num_steps
    y = x0
    for _ in range(num_steps):
        k1 = f(y)
        k2 = f(y + 0.5 * dt * k1)
        k3 = f(y + 0.5 * dt * k2)
        k4 = f(y + dt * k3)
        y = y + (dt / 6.0) * (k1 + 2.0 * k2 + 2.0 * k3 + k4)
    z = jnp.maximum(y[:, : w1.shape[1]], 0.0)
    return adj @ (z @ w2) + b2


if __name__ == "__main__":
    # Small synthetic problem: N nodes, F input features, H hidden, C classes.
    N, F, H, C = 16, 8, 32, 4
    T = 1.0          # ODE integration time (opt-level `time`)
    ALPHA = 1.0      # opt['alpha']

    key = jax.random.PRNGKey(0)
    k_adj, k_x, k_w1, k_w2 = jax.random.split(key, 4)

    # Deterministic symmetric adjacency with self-loops, sym-normalized
    # (GCN convention: D^{-1/2} (A + I) D^{-1/2}).
    a = (jax.random.uniform(k_adj, (N, N)) < 0.3).astype(jnp.float32)
    a = jnp.maximum(a, a.T)
    a = a + jnp.eye(N, dtype=jnp.float32)
    deg = jnp.sum(a, axis=1)
    dinv = 1.0 / jnp.sqrt(deg)
    adj = dinv[:, None] * a * dinv[None, :]

    # Node features.
    x = jax.random.normal(k_x, (N, F), dtype=jnp.float32)

    # GCNConv weights (glorot-ish normal), biases zero.
    w1 = jax.random.normal(k_w1, (F, H), dtype=jnp.float32) * (1.0 / jnp.sqrt(F))
    b1 = jnp.zeros((1, H), dtype=jnp.float32)
    w2 = jax.random.normal(k_w2, (H, C), dtype=jnp.float32) * (1.0 / jnp.sqrt(H))
    b2 = jnp.zeros((1, C), dtype=jnp.float32)

    # ODEFunc.alpha_train = alpha * ones(N)  (kept 2-D, (N,1), for TPU layout)
    alpha = ALPHA * jnp.ones((N, 1), dtype=jnp.float32)

    ref = reference_forward(adj, x, w1, b1, w2, b2, alpha, t_final=T, num_steps=10)

    # Exercise both ODE paths (the auto heuristic picks "propagator" at this size).
    out_prop = custom_gnn_forward(adj, x, w1, b1, w2, b2, alpha,
                                  t_final=T, num_steps=10, ode_mode="propagator")
    out_prop = jax.block_until_ready(out_prop)
    out_dir = custom_gnn_forward(adj, x, w1, b1, w2, b2, alpha,
                                 t_final=T, num_steps=10, ode_mode="direct")
    out_dir = jax.block_until_ready(out_dir)

    assert out_prop.shape == (N, C) and out_dir.shape == (N, C)
    assert jnp.allclose(out_dir, ref, atol=1e-4, rtol=1e-4), "direct path mismatch vs reference"
    assert jnp.allclose(out_prop, ref, atol=1e-4, rtol=1e-4), "propagator path mismatch vs reference"

    print("KERNEL_OK")
</pallas_src>

<mosaic_0001>
module attributes {stable_mosaic.version = 11 : i64} {
  func.func @gnn_kernel(%arg0: memref<128x128xf32, #tpu.memory_space<any>>, %arg1: memref<128x128xf32, #tpu.memory_space<vmem>>, %arg2: memref<128x128xf32, #tpu.memory_space<vmem>>, %arg3: memref<1x128xf32, #tpu.memory_space<vmem>>, %arg4: memref<128x128xf32, #tpu.memory_space<vmem>>, %arg5: memref<1x128xf32, #tpu.memory_space<vmem>>, %arg6: memref<128x1xf32, #tpu.memory_space<vmem>>, %arg7: memref<128x128xf32, #tpu.memory_space<vmem>>, %arg8: memref<128x128xf32, #tpu.memory_space<vmem>>, %arg9: memref<!tpu.dma_semaphore, #tpu.memory_space<semaphore_mem>>) attributes {dimension_semantics = [], scalar_prefetch = 0 : i64, scratch_operands = 2 : i64, tpu.core_type = #tpu.core_type<tc>} {
    tpu.enqueue_dma source(%arg0 : memref<128x128xf32, #tpu.memory_space<any>>) target(%arg8 : memref<128x128xf32, #tpu.memory_space<vmem>>) target_semaphore(%arg9 : memref<!tpu.dma_semaphore, #tpu.memory_space<semaphore_mem>>)
    %c0 = arith.constant 0 : index
    %c0_0 = arith.constant 0 : index
    %0 = vector.load %arg1[%c0, %c0_0] : memref<128x128xf32, #tpu.memory_space<vmem>>, vector<128x128xf32>
    %c0_1 = arith.constant 0 : index
    %c0_2 = arith.constant 0 : index
    %1 = vector.load %arg2[%c0_1, %c0_2] : memref<128x128xf32, #tpu.memory_space<vmem>>, vector<128x128xf32>
    %cst = arith.constant dense<0.000000e+00> : vector<128x128xf32>
    %2 = tpu.matmul %0, %1, %cst {dimension_numbers = #tpu.dot_dimension_numbers<[1], [0], [0], [1], [0, 0, 1, 1], [], []>} : vector<128x128xf32>, vector<128x128xf32>, vector<128x128xf32> -> vector<128x128xf32>
    %c0_3 = arith.constant 0 : index
    %c0_4 = arith.constant 0 : index
    %3 = vector.load %arg6[%c0_3, %c0_4] : memref<128x1xf32, #tpu.memory_space<vmem>>, vector<128x1xf32>
    %cst_5 = arith.constant 0.000000e+00 : f32
    %4 = vector.broadcast %cst_5 : f32 to vector<128x1xf32>
    %5 = arith.cmpf oge, %3, %4 : vector<128x1xf32>
    %cst_6 = arith.constant 0.00999999977 : f32
    %6 = vector.broadcast %cst_6 : f32 to vector<128x1xf32>
    %7 = arith.mulf %6, %3 : vector<128x1xf32>
    %8 = arith.select %5, %3, %7 : vector<128x1xi1>, vector<128x1xf32>
    %cst_7 = arith.constant 6.000000e-01 : f32
    %9 = vector.broadcast %cst_7 : f32 to vector<128x1xf32>
    %10 = arith.mulf %9, %8 : vector<128x1xf32>
    tpu.wait_dma2 semaphore(%arg9 : memref<!tpu.dma_semaphore, #tpu.memory_space<semaphore_mem>>) src(%arg0 : memref<128x128xf32, #tpu.memory_space<any>>) dst(%arg8 : memref<128x128xf32, #tpu.memory_space<vmem>>)
    %c0_8 = arith.constant 0 : index
    %c0_9 = arith.constant 0 : index
    %11 = vector.load %arg8[%c0_8, %c0_9] : memref<128x128xf32, #tpu.memory_space<vmem>>, vector<128x128xf32>
    %cst_10 = arith.constant dense<0.000000e+00> : vector<128x128xf32>
    %12 = tpu.matmul %11, %2, %cst_10 {dimension_numbers = #tpu.dot_dimension_numbers<[1], [0], [0], [1], [0, 0, 1, 1], [], []>} : vector<128x128xf32>, vector<128x128xf32>, vector<128x128xf32> -> vector<128x128xf32>
    %c0_11 = arith.constant 0 : index
    %c0_12 = arith.constant 0 : index
    %13 = vector.load %arg3[%c0_11, %c0_12] : memref<1x128xf32, #tpu.memory_space<vmem>>, vector<1x128xf32>
    %14 = vector.broadcast %13 : vector<1x128xf32> to vector<128x128xf32>
    %15 = arith.addf %12, %14 : vector<128x128xf32>
    %16 = tpu.iota {dimensions = array<i32: 0>} : vector<128x128xi32>
    %17 = tpu.iota {dimensions = array<i32: 1>} : vector<128x128xi32>
    %18 = arith.cmpi eq, %16, %17 : vector<128x128xi32>
    %19 = arith.extui %18 : vector<128x128xi1> to vector<128x128xi32>
    %20 = arith.sitofp %19 : vector<128x128xi32> to vector<128x128xf32>
    %21 = arith.subf %11, %20 : vector<128x128xf32>
    %22 = vector.broadcast %10 : vector<128x1xf32> to vector<128x128xf32>
    %23 = arith.mulf %22, %21 : vector<128x128xf32>
    %cst_13 = arith.constant 1.000000e-01 : f32
    %cst_14 = arith.constant 4.000000e+00 : f32
    %24 = arith.divf %cst_13, %cst_14 : f32
    %25 = vector.broadcast %24 : f32 to vector<128x128xf32>
    %26 = arith.mulf %25, %23 : vector<128x128xf32>
    %cst_15 = arith.constant 1.000000e-01 : f32
    %cst_16 = arith.constant 3.000000e+00 : f32
    %27 = arith.divf %cst_15, %cst_16 : f32
    %cst_17 = arith.constant dense<0.000000e+00> : vector<128x128xf32>
    %28 = tpu.matmul %23, %26, %cst_17 {dimension_numbers = #tpu.dot_dimension_numbers<[1], [0], [0], [1], [0, 0, 1, 1], [], []>} : vector<128x128xf32>, vector<128x128xf32>, vector<128x128xf32> -> vector<128x128xf32>
    %29 = arith.addf %23, %28 : vector<128x128xf32>
    %30 = vector.broadcast %27 : f32 to vector<128x128xf32>
    %31 = arith.mulf %30, %29 : vector<128x128xf32>
    %cst_18 = arith.constant 1.000000e-01 : f32
    %cst_19 = arith.constant 2.000000e+00 : f32
    %32 = arith.divf %cst_18, %cst_19 : f32
    %cst_20 = arith.constant dense<0.000000e+00> : vector<128x128xf32>
    %33 = tpu.matmul %23, %31, %cst_20 {dimension_numbers = #tpu.dot_dimension_numbers<[1], [0], [0], [1], [0, 0, 1, 1], [], []>} : vector<128x128xf32>, vector<128x128xf32>, vector<128x128xf32> -> vector<128x128xf32>
    %34 = arith.addf %23, %33 : vector<128x128xf32>
    %35 = vector.broadcast %32 : f32 to vector<128x128xf32>
    %36 = arith.mulf %35, %34 : vector<128x128xf32>
    %cst_21 = arith.constant dense<0.000000e+00> : vector<128x128xf32>
    %37 = tpu.matmul %36, %15, %cst_21 {dimension_numbers = #tpu.dot_dimension_numbers<[1], [0], [0], [1], [0, 0, 1, 1], [], []>} : vector<128x128xf32>, vector<128x128xf32>, vector<128x128xf32> -> vector<128x128xf32>
    %38 = arith.addf %15, %37 : vector<128x128xf32>
    %cst_22 = arith.constant 1.000000e-01 : f32
    %39 = vector.broadcast %cst_22 : f32 to vector<128x128xf32>
    %40 = arith.mulf %39, %38 : vector<128x128xf32>
    %cst_23 = arith.constant dense<0.000000e+00> : vector<128x128xf32>
    %41 = tpu.matmul %23, %36, %cst_23 {dimension_numbers = #tpu.dot_dimension_numbers<[1], [0], [0], [1], [0, 0, 1, 1], [], []>} : vector<128x128xf32>, vector<128x128xf32>, vector<128x128xf32> -> vector<128x128xf32>
    %42 = arith.addf %23, %41 : vector<128x128xf32>
    %cst_24 = arith.constant 1.000000e-01 : f32
    %43 = vector.broadcast %cst_24 : f32 to vector<128x128xf32>
    %44 = arith.mulf %43, %42 : vector<128x128xf32>
    %c0_i32 = arith.constant 0 : i32
    %c10_i32 = arith.constant 10 : i32
    %45 = arith.addi %c0_i32, %c10_i32 : i32
    %c1_i32 = arith.constant 1 : i32
    %46 = scf.for %arg10 = %c0_i32 to %45 step %c1_i32 iter_args(%arg11 = %15) -> (vector<128x128xf32>)  : i32 {
      %cst_34 = arith.constant dense<0.000000e+00> : vector<128x128xf32>
      %56 = tpu.matmul %44, %arg11, %cst_34 {dimension_numbers = #tpu.dot_dimension_numbers<[1], [0], [0], [1], [0, 0, 1, 1], [], []>} : vector<128x128xf32>, vector<128x128xf32>, vector<128x128xf32> -> vector<128x128xf32>
      %57 = arith.addf %arg11, %56 : vector<128x128xf32>
      %58 = arith.addf %57, %40 : vector<128x128xf32>
      scf.yield %58 : vector<128x128xf32>
    }
    %cst_25 = arith.constant 0.000000e+00 : f32
    %47 = vector.broadcast %cst_25 : f32 to vector<128x128xf32>
    %48 = arith.maximumf %46, %47 : vector<128x128xf32>
    %c0_26 = arith.constant 0 : index
    %c0_27 = arith.constant 0 : index
    %49 = vector.load %arg4[%c0_26, %c0_27] : memref<128x128xf32, #tpu.memory_space<vmem>>, vector<128x128xf32>
    %cst_28 = arith.constant dense<0.000000e+00> : vector<128x128xf32>
    %50 = tpu.matmul %48, %49, %cst_28 {dimension_numbers = #tpu.dot_dimension_numbers<[1], [0], [0], [1], [0, 0, 1, 1], [], []>} : vector<128x128xf32>, vector<128x128xf32>, vector<128x128xf32> -> vector<128x128xf32>
    %cst_29 = arith.constant dense<0.000000e+00> : vector<128x128xf32>
    %51 = tpu.matmul %11, %50, %cst_29 {dimension_numbers = #tpu.dot_dimension_numbers<[1], [0], [0], [1], [0, 0, 1, 1], [], []>} : vector<128x128xf32>, vector<128x128xf32>, vector<128x128xf32> -> vector<128x128xf32>
    %c0_30 = arith.constant 0 : index
    %c0_31 = arith.constant 0 : index
    %52 = vector.load %arg5[%c0_30, %c0_31] : memref<1x128xf32, #tpu.memory_space<vmem>>, vector<1x128xf32>
    %53 = vector.broadcast %52 : vector<1x128xf32> to vector<128x128xf32>
    %54 = arith.addf %51, %53 : vector<128x128xf32>
    %c0_32 = arith.constant 0 : index
    %c0_33 = arith.constant 0 : index
    %55 = vector.load %arg7[%c0_32, %c0_33] : memref<128x128xf32, #tpu.memory_space<vmem>>, vector<128x128xf32>
    tpu.vector_store %arg7[%c0_32, %c0_33], %54 {strides = array<i32>} : memref<128x128xf32, #tpu.memory_space<vmem>>, vector<128x128xf32>,
    return
  }
}

</mosaic_0001>

<bundles_post_ra>
// kernel: tpu_custom_call.1
= control target key start
LH: loop header
LB: loop body
LE: loop exit
PB: predicated region body
PF: predicated region fallthrough
CT: control target
= control target key end

     0   :  { %12 = vsyncpa [#allocation5], 0  ;;  %s2860_s0 = inlined_call_operand.vmem [shape: f32[128,128], index: 0, kind: input, shape index: {}]   ;;  %s2861_s1 = inlined_call_operand.hbm [shape: f32[128,128], index: 1, kind: input, shape index: {}]   ;;  %s2862_s2 = inlined_call_operand.hbm [shape: f32[128,128], index: 2, kind: input, shape index: {}]   ;;  %s2863_s3 = inlined_call_operand.vmem [shape: f32[1,128], index: 3, kind: input, shape index: {}]   ;;  %s2864_s4 = inlined_call_operand.hbm [shape: f32[128,128], index: 4, kind: input, shape index: {}]   ;;  %s2865_s5 = inlined_call_operand.vmem [shape: f32[1,128], index: 5, kind: input, shape index: {}]   ;;  %s2866_s6 = inlined_call_operand.vmem [shape: f32[128,1], index: 6, kind: input, shape index: {}]   ;;  %s2867_s7 = inlined_call_operand.hbm [shape: f32[128,128], index: 7, kind: output, shape index: {}]  }
   0x1   :  { %13 = vsyncpa [#allocation8], 0 }
   0x2   :  { %14 = vsyncpa [#allocation6], 0  ;;  %s32_s26 = sshll.u32 %s2862_s2, 4  ;;  %s1870_s27 = smov [#allocation7]   ;;  %s33_s26 = int_to_ptr.hbm [resolvable:$true] %s32_s26 }
   0x3   :  { %s34_s28 = sshll.u32 %s1870_s27, 4  ;;  %s19_s8 = sshll.u32 %s2861_s1, 4  ;;  %s35_s28 = int_to_ptr.vmem [resolvable:$true] %s34_s28  ;;  %s20_s8 = int_to_ptr.hbm [resolvable:$true] %s19_s8 }
   0x4   :  { %s1871_s9 = smov 128   ;;  %s1872_s10 = smov 8  }
   0x5   :  { %40 = dma.hbm_to_vmem [thread:$0]  %s33_s26, 2048, %s35_s28, [#allocation8], %s1871_s9, %s1871_s9, %s1872_s10  }
   0x6   :  { %s1873_s11 = smov [#allocation4]   ;;  %s47_s2 = sshll.u32 %s2864_s4, 4  ;;  %s48_s2 = int_to_ptr.hbm [resolvable:$true] %s47_s2 }
   0x7   :  { %s21_s12 = sshll.u32 %s1873_s11, 4  ;;  %s1874_s1 = smov [#allocation9]   ;;  %s22_s12 = int_to_ptr.vmem [resolvable:$true] %s21_s12 }
   0x8   :  { %27 = dma.hbm_to_vmem [thread:$0]  %s20_s8, 2048, %s22_s12, [#allocation5], %s1871_s9, %s1871_s9, %s1872_s10  }
   0x9   :  { %s49_s15 = sshll.u32 %s1874_s1, 4  ;;  %s50_s15 = int_to_ptr.vmem [resolvable:$true] %s49_s15 }
   0xa   :  { %55 = dma.hbm_to_vmem [thread:$0]  %s48_s2, 2048, %s50_s15, [#allocation8], %s1871_s9, %s1871_s9, %s1872_s10  }
   0xb   :  { %1794 = dma.done.wait [#allocation5], 2048  }
   0xc   :  { %1795 = vsyncadd [#allocation5], 4294965248 }
   0xd   :  { %1796 = dma.done.wait [#allocation8], 4096  }
   0xe   :  { %1797 = vsyncadd [#allocation8], 4294963200  ;;  %v1939_v0 = vld [vmem:[%s2860_s0] sm:$0xff]  ;;  %v1944_v1 = vld [vmem:[%s2860_s0 + $0x8] sm:$0xff] }
   0xf   :  { %2888 = vst [vmem:[#allocation16_spill] sm:$0xff] %v1939_v0  ;;  %v1949_v2 = vld [vmem:[%s2860_s0 + $0x10] sm:$0xff]  ;;  %v1954_v3 = vld [vmem:[%s2860_s0 + $0x18] sm:$0xff]  ;;  %v1959_v4 = vld [vmem:[%s2860_s0 + $0x20] sm:$0xff] }
  0x10   :  { %2889 = vst [vmem:[#allocation17_spill] sm:$0xff] %v1944_v1  ;;  %v1964_v5 = vld [vmem:[%s2860_s0 + $0x28] sm:$0xff]  ;;  %v1969_v6 = vld [vmem:[%s2860_s0 + $0x30] sm:$0xff]  ;;  %v1974_v7 = vld [vmem:[%s2860_s0 + $0x38] sm:$0xff] }
  0x11   :  { %2890 = vst [vmem:[#allocation18_spill] sm:$0xff] %v1949_v2  ;;  %v1979_v8 = vld [vmem:[%s2860_s0 + $0x40] sm:$0xff]  ;;  %v1984_v9 = vld [vmem:[%s2860_s0 + $0x48] sm:$0xff]  ;;  %v1989_v10 = vld [vmem:[%s2860_s0 + $0x50] sm:$0xff] }
  0x12   :  { %2891 = vst [vmem:[#allocation19_spill] sm:$0xff] %v1954_v3  ;;  %v1994_v11 = vld [vmem:[%s2860_s0 + $0x58] sm:$0xff]  ;;  %v1999_v12 = vld [vmem:[%s2860_s0 + $0x60] sm:$0xff]  ;;  %v2004_v13 = vld [vmem:[%s2860_s0 + $0x68] sm:$0xff] }
  0x13   :  { %2892 = vst [vmem:[#allocation20_spill] sm:$0xff] %v1959_v4  ;;  %v2009_v14 = vld [vmem:[%s2860_s0 + $0x70] sm:$0xff]  ;;  %v2014_v15 = vld [vmem:[%s2860_s0 + $0x78] sm:$0xff] }
  0x14   :  { %2893 = vst [vmem:[#allocation21_spill] sm:$0xff] %v1964_v5  ;;  %v151_v16 = vld [vmem:[#allocation7 + $0x78] sm:$0xff]  ;;  %v150_v17 = vld [vmem:[#allocation7 + $0x70] sm:$0xff] }
  0x15   :  { %2894 = vst [vmem:[#allocation22_spill] sm:$0xff] %v1969_v6  ;;  %1369 = vmatpush.msra.mxu2 %v151_v16 }
  0x16   :  { %2895 = vst [vmem:[#allocation23_spill] sm:$0xff] %v1974_v7 }
  0x17   :  { %2896 = vst [vmem:[#allocation24_spill] sm:$0xff] %v1979_v8 }
  0x18   :  { %2897 = vst [vmem:[#allocation25_spill] sm:$0xff] %v1984_v9 }
  0x19   :  { %2898 = vst [vmem:[#allocation26_spill] sm:$0xff] %v1989_v10 }
  0x1a   :  { %2899 = vst [vmem:[#allocation27_spill] sm:$0xff] %v1994_v11 }
  0x1b   :  { %2900 = vst [vmem:[#allocation28_spill] sm:$0xff] %v1999_v12 }
  0x1c   :  { %2901 = vst [vmem:[#allocation29_spill] sm:$0xff] %v2004_v13 }
  0x1d   :  { %2902 = vst [vmem:[#allocation30_spill] sm:$0xff] %v2009_v14 }
  0x1e   :  { %2903 = vst [vmem:[#allocation31_spill] sm:$0xff] %v2014_v15 }
  0x1f   :  { %119 = vsyncadd [#allocation3], 2048  ;;  %152 = vmatpush.msra.mxu0 %v151_v16  ;;  %v149_v18 = vld [vmem:[#allocation7 + $0x68] sm:$0xff]  ;;  %1370 = vmatpush.msra.mxu2 %v150_v17  ;;  %v148_v19 = vld [vmem:[#allocation7 + $0x60] sm:$0xff] }
  0x20   :  { %v147_v20 = vld [vmem:[#allocation7 + $0x58] sm:$0xff]  ;;  %v146_v21 = vld [vmem:[#allocation7 + $0x50] sm:$0xff]  ;;  %v145_v22 = vld [vmem:[#allocation7 + $0x48] sm:$0xff] }
  0x21   :  { %153 = vmatpush.msra.mxu0 %v150_v17  ;;  %1371 = vmatpush.msra.mxu2 %v149_v18  ;;  %v144_v23 = vld [vmem:[#allocation7 + $0x40] sm:$0xff]  ;;  %v143_v24 = vld [vmem:[#allocation7 + $0x38] sm:$0xff]  ;;  %v142_v25 = vld [vmem:[#allocation7 + $0x30] sm:$0xff] }
  0x22   :  { %v141_v26 = vld [vmem:[#allocation7 + $0x28] sm:$0xff]  ;;  %v140_v27 = vld [vmem:[#allocation7 + $0x20] sm:$0xff]  ;;  %v139_v28 = vld [vmem:[#allocation7 + $0x18] sm:$0xff] }
  0x23   :  { %154 = vmatpush.msra.mxu0 %v149_v18  ;;  %1372 = vmatpush.msra.mxu2 %v148_v19  ;;  %v138_v29 = vld [vmem:[#allocation7 + $0x10] sm:$0xff]  ;;  %v137_v30 = vld [vmem:[#allocation7 + $0x8] sm:$0xff]  ;;  %v136_v31 = vld [vmem:[#allocation7] sm:$0xff] }
  0x24   :  { %v128_v32 = vld [vmem:[#allocation4 + $0x40] sm:$0xff]  ;;  %v129_v34 = vld [vmem:[#allocation4 + $0x48] sm:$0xff]  ;;  %v130_v36 = vld [vmem:[#allocation4 + $0x50] sm:$0xff] }
  0x25   :  { %155 = vmatpush.msra.mxu0 %v148_v19  ;;  %1373 = vmatpush.msra.mxu2 %v147_v20  ;;  %v120_v33 = vld [vmem:[#allocation4] sm:$0xff]  ;;  %v121_v35 = vld [vmem:[#allocation4 + $0x8] sm:$0xff]  ;;  %v122_v37 = vld [vmem:[#allocation4 + $0x10] sm:$0xff] }
  0x26   :  { %v131_v38 = vld [vmem:[#allocation4 + $0x58] sm:$0xff]  ;;  %v132_v40 = vld [vmem:[#allocation4 + $0x60] sm:$0xff]  ;;  %v133_v42 = vld [vmem:[#allocation4 + $0x68] sm:$0xff] }
  0x27   :  { %156 = vmatpush.msra.mxu0 %v147_v20  ;;  %1374 = vmatpush.msra.mxu2 %v146_v21  ;;  %v123_v39 = vld [vmem:[#allocation4 + $0x18] sm:$0xff]  ;;  %v124_v41 = vld [vmem:[#allocation4 + $0x20] sm:$0xff]  ;;  %v125_v43 = vld [vmem:[#allocation4 + $0x28] sm:$0xff] }
  0x28   :  { %v134_v44 = vld [vmem:[#allocation4 + $0x70] sm:$0xff]  ;;  %v135_v46 = vld [vmem:[#allocation4 + $0x78] sm:$0xff]  ;;  %v217_v55 = vld [vmem:[%s2866_s6] sm:$0xff] }
  0x29   :  { %157 = vmatpush.msra.mxu0 %v146_v21  ;;  %1375 = vmatpush.msra.mxu2 %v145_v22  ;;  %v126_v45 = vld [vmem:[#allocation4 + $0x30] sm:$0xff]  ;;  %v127_v47 = vld [vmem:[#allocation4 + $0x38] sm:$0xff]  ;;  %v218_v56 = vld [vmem:[%s2866_s6 + $0x8] sm:$0xff]  ;;  %v249_v61 = vmul.f32 0.01, %v217_v55  ;;  %vm233_vm0 = vcmp.ge.f32.partialorder %v217_v55, 0.0 }
  0x2a   :  { %v219_v57 = vld [vmem:[%s2866_s6 + $0x10] sm:$0xff]  ;;  %v220_v58 = vld [vmem:[%s2866_s6 + $0x18] sm:$0xff]  ;;  %v221_v59 = vld [vmem:[%s2866_s6 + $0x20] sm:$0xff]  ;;  %vm234_vm1 = vcmp.ge.f32.partialorder %v218_v56, 0.0 }
  0x2b   :  { %158 = vmatpush.msra.mxu0 %v145_v22  ;;  %1376 = vmatpush.msra.mxu2 %v144_v23  ;;  %v222_v60 = vld [vmem:[%s2866_s6 + $0x28] sm:$0xff]  ;;  %v223_v62 = vld [vmem:[%s2866_s6 + $0x30] sm:$0xff]  ;;  %v224_v63 = vld [vmem:[%s2866_s6 + $0x38] sm:$0xff]  ;;  %vm235_vm2 = vcmp.ge.f32.partialorder %v219_v57, 0.0  ;;  %vm236_vm3 = vcmp.ge.f32.partialorder %v220_v58, 0.0  ;;  %vm237_vm4 = vcmp.ge.f32.partialorder %v221_v59, 0.0 }
  0x2c   :  { %v225_v16 = vld [vmem:[%s2866_s6 + $0x40] sm:$0xff]  ;;  %v226_v17 = vld [vmem:[%s2866_s6 + $0x48] sm:$0xff]  ;;  %v227_v18 = vld [vmem:[%s2866_s6 + $0x50] sm:$0xff]  ;;  %vm238_vm5 = vcmp.ge.f32.partialorder %v222_v60, 0.0  ;;  %vm239_vm6 = vcmp.ge.f32.partialorder %v223_v62, 0.0  ;;  %vm240_vm7 = vcmp.ge.f32.partialorder %v224_v63, 0.0 }
  0x2d   :  { %159 = vmatpush.msra.mxu0 %v144_v23  ;;  %1377 = vmatpush.msra.mxu2 %v143_v24  ;;  %v228_v19 = vld [vmem:[%s2866_s6 + $0x58] sm:$0xff]  ;;  %v229_v21 = vld [vmem:[%s2866_s6 + $0x60] sm:$0xff]  ;;  %v230_v22 = vld [vmem:[%s2866_s6 + $0x68] sm:$0xff]  ;;  %vm241_vm8 = vcmp.ge.f32.partialorder %v225_v16, 0.0  ;;  %vm242_vm9 = vcmp.ge.f32.partialorder %v226_v17, 0.0  ;;  %vm243_vm10 = vcmp.ge.f32.partialorder %v227_v18, 0.0 }
  0x2e   :  { %v231_v23 = vld [vmem:[%s2866_s6 + $0x70] sm:$0xff]  ;;  %vm244_vm11 = vcmp.ge.f32.partialorder %v228_v19, 0.0  ;;  %vm245_vm12 = vcmp.ge.f32.partialorder %v229_v21, 0.0  ;;  %vm246_vm13 = vcmp.ge.f32.partialorder %v230_v22, 0.0 }
  0x2f   :  { %160 = vmatpush.msra.mxu0 %v143_v24  ;;  %1378 = vmatpush.msra.mxu2 %v142_v25  ;;  %v232_v24 = vld [vmem:[%s2866_s6 + $0x78] sm:$0xff]  ;;  %vm247_vm14 = vcmp.ge.f32.partialorder %v231_v23, 0.0 }
  0x30   :  { %vm248_vm15 = vcmp.ge.f32.partialorder %v232_v24, 0.0 }
  0x31   :  { %161 = vmatpush.msra.mxu0 %v142_v25  ;;  %1379 = vmatpush.msra.mxu2 %v141_v26 }
  0x33   :  { %162 = vmatpush.msra.mxu0 %v141_v26  ;;  %1380 = vmatpush.msra.mxu2 %v140_v27  ;;  %v250_v26 = vmul.f32 0.01, %v218_v56 }
  0x35   :  { %163 = vmatpush.msra.mxu0 %v140_v27  ;;  %1381 = vmatpush.msra.mxu2 %v139_v28  ;;  %v251_v27 = vmul.f32 0.01, %v219_v57 }
  0x37   :  { %164 = vmatpush.msra.mxu0 %v139_v28  ;;  %1382 = vmatpush.msra.mxu2 %v138_v29  ;;  %v252_v28 = vmul.f32 0.01, %v220_v58 }
  0x39   :  { %165 = vmatpush.msra.mxu0 %v138_v29  ;;  %1383 = vmatpush.msra.mxu2 %v137_v30  ;;  %v253_v29 = vmul.f32 0.01, %v221_v59 }
  0x3b   :  { %166 = vmatpush.msra.mxu0 %v137_v30  ;;  %1384 = vmatpush.msra.mxu2 %v136_v31  ;;  %v254_v30 = vmul.f32 0.01, %v222_v60 }
  0x3c   :  { %192 = vmatmul.f32.vlgmr.msra.gmra.mxu2 %v128_v32  ;;  %v256_v32 = vmul.f32 0.01, %v224_v63 }
  0x3d   :  { %167 = vmatpush.msra.mxu0 %v136_v31  ;;  %v255_v31 = vmul.f32 0.01, %v223_v62 }
  0x3e   :  { %168 = vmatmul.f32.vlgmr.msra.gmra.mxu0 %v120_v33  ;;  %v257_v33 = vmul.f32 0.01, %v225_v16 }
  0x3f   :  { %v271_v7 = vsel %vm239_vm6, %v223_v62, %v255_v31 }
  0x44   :  { %195 = vmatmul.f32.gmra.mxu2 %v129_v34  ;;  %v258_v34 = vmul.f32 0.01, %v226_v17 }
  0x46   :  { %171 = vmatmul.f32.gmra.mxu0 %v121_v35  ;;  %v259_v35 = vmul.f32 0.01, %v227_v18  ;;  %v274_v15 = vsel %vm242_vm9, %v226_v17, %v258_v34 }
  0x4c   :  { %198 = vmatmul.f32.gmra.mxu2 %v130_v36  ;;  %v265_v36 = vsel %vm233_vm0, %v217_v55, %v249_v61  ;;  %v272_v55 = vsel %vm240_vm7, %v224_v63, %v256_v32  ;;  %v273_v61 = vsel %vm241_vm8, %v225_v16, %v257_v33 }
  0x4e   :  { %174 = vmatmul.f32.gmra.mxu0 %v122_v37  ;;  %v260_v37 = vmul.f32 0.01, %v228_v19 }
  0x54   :  { %201 = vmatmul.f32.gmra.mxu2 %v131_v38  ;;  %v261_v38 = vmul.f32 0.01, %v229_v21 }
  0x56   :  { %177 = vmatmul.f32.gmra.mxu0 %v123_v39  ;;  %v262_v39 = vmul.f32 0.01, %v230_v22 }
  0x5c   :  { %204 = vmatmul.f32.gmra.mxu2 %v132_v40  ;;  %v266_v40 = vsel %vm234_vm1, %v218_v56, %v250_v26  ;;  %v275_v56 = vsel %vm243_vm10, %v227_v18, %v259_v35  ;;  %v276_v26 = vsel %vm244_vm11, %v228_v19, %v260_v37 }
  0x5d   :  { %v291_v31 = vmul.f32 0.6, %v275_v56 }
  0x5e   :  { %180 = vmatmul.f32.gmra.mxu0 %v124_v41  ;;  %v263_v41 = vmul.f32 0.01, %v231_v23 }
  0x60   :  { %v279_v62 = vsel %vm247_vm14, %v231_v23, %v263_v41 }
  0x61   :  { %v295_v34 = vmul.f32 0.6, %v279_v62 }
  0x64   :  { %207 = vmatmul.f32.gmra.mxu2 %v133_v42  ;;  %v264_v42 = vmul.f32 0.01, %v232_v24 }
  0x66   :  { %183 = vmatmul.f32.gmra.mxu0 %v125_v43  ;;  %v267_v43 = vsel %vm235_vm2, %v219_v57, %v251_v27  ;;  %v2098_v27 = vmul.f32 0.6, %v265_v36  ;;  %v280_v18 = vsel %vm248_vm15, %v232_v24, %v264_v42 }
  0x67   :  { %v2103_v63 = vmul.f32 0.6, %v267_v43  ;;  %v296_v35 = vmul.f32 0.6, %v280_v18 }
  0x6c   :  { %210 = vmatmul.f32.gmra.mxu2 %v134_v44  ;;  %v268_v44 = vsel %vm236_vm3, %v220_v58, %v252_v28  ;;  %v277_v58 = vsel %vm245_vm12, %v229_v21, %v261_v38  ;;  %v287_v28 = vmul.f32 0.6, %v271_v7  ;;  %v290_v21 = vmul.f32 0.6, %v274_v15 }
  0x6d   :  { %v2105_v16 = vmul.f32 0.6, %v268_v44  ;;  %v293_v32 = vmul.f32 0.6, %v277_v58 }
  0x6e   :  { %186 = vmatmul.f32.gmra.mxu0 %v126_v45 }
  0x74   :  { %213 = vmatmul.f32.gmra.mxu2 %v135_v46  ;;  %v269_v46 = vsel %vm237_vm4, %v221_v59, %v253_v29  ;;  %v278_v59 = vsel %vm246_vm13, %v230_v22, %v262_v39  ;;  %v288_v29 = vmul.f32 0.6, %v272_v55  ;;  %v292_v22 = vmul.f32 0.6, %v276_v26 }
  0x75   :  { %v285_v17 = vmul.f32 0.6, %v269_v46  ;;  %v294_v33 = vmul.f32 0.6, %v278_v59 }
  0x76   :  { %189 = vmatmul.f32.gmra.mxu0 %v127_v47  ;;  %v270_v47 = vsel %vm238_vm5, %v222_v60, %v254_v30  ;;  %v2100_v60 = vmul.f32 0.6, %v266_v40  ;;  %v289_v30 = vmul.f32 0.6, %v273_v61 }
  0x77   :  { %v286_v19 = vmul.f32 0.6, %v270_v47 }
  0xbb   :  { %v2016_v48 = vpop.f32.mrf.mxu0 }
  0xbf   :  { %v2018_v49 = vpop.f32.mrf.mxu2 }
  0xc3   :  { %v2020_v50 = vpop.f32.mrf.mxu0 }
  0xc7   :  { %v2022_v51 = vpop.f32.mrf.mxu2 }
  0xcb   :  { %v2024_v52 = vpop.f32.mrf.mxu0 }
  0xcf   :  { %v2026_v53 = vpop.f32.mrf.mxu2 }
  0xd3   :  { %v2028_v54 = vpop.f32.mrf.mxu0 }
  0xd7   :  { %v2066_v20 = vpop.f32.mrf.mxu2 }
  0xdb   :  { %v2080_v25 = vpop.f32.mrf.mxu0 }
  0xdf   :  { %v205_v45 = vpop.f32.mrf.mxu2 }
  0xe3   :  { %v2094_v57 = vpop.f32.mrf.mxu0 }
  0xe7   :  { %v208_v36 = vpop.f32.mrf.mxu2 }
  0xeb   :  { %v187_v23 = vpop.f32.mrf.mxu0 }
  0xef   :  { %v211_v37 = vpop.f32.mrf.mxu2 }
  0xf3   :  { %v190_v38 = vpop.f32.mrf.mxu0 }
  0xf7   :  { %v214_v39 = vpop.f32.mrf.mxu2 }
  0xf8   :  { %1385 = vmatpush.msra.mxu3 %v214_v39  ;;  %320 = vmatpush.msra.mxu1 %v214_v39 }
  0xf9   :  { %1798 = dma.done.wait [#allocation3], 2048 }
  0xfa   :  { %1799 = vsyncadd [#allocation3], 4294965248  ;;  %v1875_v24 = vmov 0   ;;  %1386 = vmatpush.msra.mxu3 %v211_v37  ;;  %321 = vmatpush.msra.mxu1 %v211_v37  ;;  %v2904_v7 = vld [vmem:[#allocation31_spill] sm:$0xff] }
  0xfb   :  { %1627 = vset.pattern.permute.xlu2 %v1875_v24  ;;  %1626 = vset.pattern.permute.xlu1 %v1875_v24  ;;  %v2905_v15 = vld [vmem:[#allocation23_spill] sm:$0xff] }
  0xfc   :  { %1625 = vset.pattern.permute.xlu0 %v1875_v24  ;;  %525 = vperm.xlu2 %1627, %v292_v22  }
  0xfd   :  { %535 = vperm.xlu1 %1626, %v294_v33   ;;  %545 = vperm.xlu0 %1625, %v296_v35  }
  0xfe   :  { %1387 = vmatpush.msra.mxu3 %v208_v36  ;;  %322 = vmatpush.msra.mxu1 %v208_v36 }
 0x100   :  { %1388 = vmatpush.msra.mxu3 %v205_v45  ;;  %323 = vmatpush.msra.mxu1 %v205_v45 }
 0x102   :  { %1389 = vmatpush.msra.mxu3 %v2066_v20  ;;  %324 = vmatpush.msra.mxu1 %v2066_v20 }
 0x104   :  { %520 = vperm.xlu2 %1627, %v291_v31   ;;  %1390 = vmatpush.msra.mxu3 %v2026_v53 }
 0x105   :  { %530 = vperm.xlu1 %1626, %v293_v32   ;;  %540 = vperm.xlu0 %1625, %v295_v34  }
 0x106   :  { %1391 = vmatpush.msra.mxu3 %v2022_v51  ;;  %325 = vmatpush.msra.mxu1 %v2026_v53  ;;  %v1876_v53 = vmov 0.0  }
 0x108   :  { %1392 = vmatpush.msra.mxu3 %v2018_v49  ;;  %326 = vmatpush.msra.mxu1 %v2022_v51 }
 0x10a   :  { %1393 = vmatpush.msra.mxu3 %v190_v38  ;;  %327 = vmatpush.msra.mxu1 %v2018_v49 }
 0x10c   :  { %505 = vperm.xlu2 %1627, %v288_v29   ;;  %1394 = vmatpush.msra.mxu3 %v187_v23 }
 0x10d   :  { %510 = vperm.xlu1 %1626, %v289_v30   ;;  %515 = vperm.xlu0 %1625, %v290_v21  }
 0x10e   :  { %1395 = vmatpush.msra.mxu3 %v2094_v57  ;;  %328 = vmatpush.msra.mxu1 %v190_v38 }
 0x110   :  { %1396 = vmatpush.msra.mxu3 %v2080_v25  ;;  %329 = vmatpush.msra.mxu1 %v187_v23 }
 0x112   :  { %1397 = vmatpush.msra.mxu3 %v2028_v54  ;;  %330 = vmatpush.msra.mxu1 %v2094_v57 }
 0x114   :  { %490 = vperm.xlu2 %1627, %v285_v17   ;;  %1398 = vmatpush.msra.mxu3 %v2024_v52 }
 0x115   :  { %495 = vperm.xlu1 %1626, %v286_v19   ;;  %500 = vperm.xlu0 %1625, %v287_v28  }
 0x116   :  { %1399 = vmatpush.msra.mxu3 %v2020_v50  ;;  %331 = vmatpush.msra.mxu1 %v2080_v25 }
 0x118   :  { %1400 = vmatpush.msra.mxu3 %v2016_v48  ;;  %332 = vmatpush.msra.mxu1 %v2028_v54 }
 0x119   :  { %360 = vmatmul.f32.vlgmr.msra.gmra.mxu3 %v1979_v8 }
 0x11a   :  { %333 = vmatpush.msra.mxu1 %v2024_v52 }
 0x11c   :  { %475 = vperm.xlu2 %1627, %v2100_v60   ;;  %334 = vmatpush.msra.mxu1 %v2020_v50 }
 0x11d   :  { %480 = vperm.xlu1 %1626, %v2103_v63   ;;  %485 = vperm.xlu0 %1625, %v2105_v16  }
 0x11e   :  { %335 = vmatpush.msra.mxu1 %v2016_v48  ;;  %v385_v48 = vlaneseq }
 0x11f   :  { %336 = vmatmul.f32.vlgmr.msra.gmra.mxu1 %v1939_v0 }
 0x120   :  { %v2148_v49 = vshrl.u32 %v385_v48, 7  ;;  %v2150_v50 = vand.u32 127, %v385_v48 }
 0x121   :  { %363 = vmatmul.f32.gmra.mxu3 %v1984_v9 }
 0x122   :  { %v401_v51 = vadd.s32 120, %v2148_v49  ;;  %v399_v20 = vadd.s32 104, %v2148_v49  ;;  %v400_v25 = vadd.s32 112, %v2148_v49  ;;  %v398_v41 = vadd.s32 96, %v2148_v49 }
 0x123   :  { %v397_v42 = vadd.s32 88, %v2148_v49  ;;  %v396_v43 = vadd.s32 80, %v2148_v49  ;;  %v394_v26 = vadd.s32 64, %v2148_v49  ;;  %v395_v57 = vadd.s32 72, %v2148_v49 }
 0x124   :  { %vm419_vm0 = vcmp.eq.s32.totalorder %v401_v51, %v2150_v50  ;;  %vm417_vm1 = vcmp.eq.s32.totalorder %v399_v20, %v2150_v50  ;;  %vm418_vm2 = vcmp.eq.s32.totalorder %v400_v25, %v2150_v50  ;;  %vm416_vm3 = vcmp.eq.s32.totalorder %v398_v41, %v2150_v50 }
 0x125   :  { %470 = vperm.xlu0 %1625, %v2098_v27   ;;  %v1367_v54 = vsel %vm419_vm0, 1.0, %v1876_v53  ;;  %v1365_v55 = vsel %vm417_vm1, 1.0, %v1876_v53  ;;  %v1366_v61 = vsel %vm418_vm2, 1.0, %v1876_v53  ;;  %vm415_vm4 = vcmp.eq.s32.totalorder %v397_v42, %v2150_v50 }
 0x126   :  { %v467_v40 = vsub.f32 %v2904_v7, %v1367_v54  ;;  %vm414_vm5 = vcmp.eq.s32.totalorder %v396_v43, %v2150_v50  ;;  %v1364_v58 = vsel %vm416_vm3, 1.0, %v1876_v53  ;;  %v465_v59 = vsub.f32 %v2004_v13, %v1365_v55 }
 0x127   :  { %339 = vmatmul.f32.gmra.mxu1 %v1944_v1  ;;  %v466_v27 = vsub.f32 %v2009_v14, %v1366_v61  ;;  %v1363_v60 = vsel %vm415_vm4, 1.0, %v1876_v53  ;;  %v393_v62 = vadd.s32 56, %v2148_v49  ;;  %v1362_v63 = vsel %vm414_vm5, 1.0, %v1876_v53 }
 0x128   :  { %v464_v16 = vsub.f32 %v1999_v12, %v1364_v58  ;;  %vm412_vm6 = vcmp.eq.s32.totalorder %v394_v26, %v2150_v50  ;;  %vm413_vm7 = vcmp.eq.s32.totalorder %v395_v57, %v2150_v50  ;;  %v463_v19 = vsub.f32 %v1994_v11, %v1363_v60 }
 0x129   :  { %366 = vmatmul.f32.gmra.mxu3 %v1989_v10  ;;  %v462_v30 = vsub.f32 %v1989_v10, %v1362_v63  ;;  %vm411_vm8 = vcmp.eq.s32.totalorder %v393_v62, %v2150_v50  ;;  %v1360_v21 = vsel %vm412_vm6, 1.0, %v1876_v53  ;;  %v1361_v31 = vsel %vm413_vm7, 1.0, %v1876_v53 }
 0x12a   :  { %v391_v34 = vadd.s32 40, %v2148_v49  ;;  %v392_v35 = vadd.s32 48, %v2148_v49  ;;  %v390_v23 = vadd.s32 32, %v2148_v49  ;;  %v461_v38 = vsub.f32 %v1984_v9, %v1361_v31 }
 0x12b   :  { %v1359_v39 = vsel %vm411_vm8, 1.0, %v1876_v53  ;;  %v460_v24 = vsub.f32 %v1979_v8, %v1360_v21  ;;  %vm404_vm15 = vcmp.eq.s32.totalorder %v2148_v49, %v2150_v50 }
 0x12c   :  { %vm409_vm9 = vcmp.eq.s32.totalorder %v391_v34, %v2150_v50  ;;  %vm410_vm10 = vcmp.eq.s32.totalorder %v392_v35, %v2150_v50  ;;  %v459_v54 = vsub.f32 %v2905_v15, %v1359_v39  ;;  %vm408_vm11 = vcmp.eq.s32.totalorder %v390_v23, %v2150_v50 }
 0x12d   :  { %v1358_v41 = vsel %vm410_vm10, 1.0, %v1876_v53 }
 0x12e   :  { %v458_v57 = vsub.f32 %v1969_v6, %v1358_v41 }
 0x12f   :  { %342 = vmatmul.f32.gmra.mxu1 %v1949_v2 }
 0x131   :  { %369 = vmatmul.f32.gmra.mxu3 %v1994_v11 }
 0x137   :  { %345 = vmatmul.f32.gmra.mxu1 %v1954_v3 }
 0x139   :  { %372 = vmatmul.f32.gmra.mxu3 %v1999_v12 }
 0x13f   :  { %348 = vmatmul.f32.gmra.mxu1 %v1959_v4 }
 0x141   :  { %375 = vmatmul.f32.gmra.mxu3 %v2004_v13 }
 0x147   :  { %351 = vmatmul.f32.gmra.mxu1 %v1964_v5 }
 0x149   :  { %378 = vmatmul.f32.gmra.mxu3 %v2009_v14 }
 0x14f   :  { %354 = vmatmul.f32.gmra.mxu1 %v1969_v6 }
 0x151   :  { %381 = vmatmul.f32.gmra.mxu3 %v2904_v7 }
 0x156   :  { %v526_v52 = vpop.permute.xlu2 %525 }
 0x157   :  { %357 = vmatmul.f32.gmra.mxu1 %v2905_v15  ;;  %v2196_v36 = vmul.f32 %v526_v52, %v463_v19  ;;  %v389_v15 = vadd.s32 24, %v2148_v49 }
 0x159   :  { %v575_v25 = vmul.f32 0.025, %v2196_v36  ;;  %vm407_vm13 = vcmp.eq.s32.totalorder %v389_v15, %v2150_v50 }
 0x15e   :  { %v521_v46 = vpop.permute.xlu2 %520 }
 0x15f   :  { %v2203_v7 = vmul.f32 %v521_v46, %v462_v30  ;;  %v387_v46 = vadd.s32 8, %v2148_v49 }
 0x161   :  { %v574_v43 = vmul.f32 0.025, %v2203_v7  ;;  %vm405_vm14 = vcmp.eq.s32.totalorder %v387_v46, %v2150_v50 }
 0x162   :  { %v1353_v21 = vsel %vm405_vm14, 1.0, %v1876_v53 }
 0x163   :  { %v453_v35 = vsub.f32 %v1944_v1, %v1353_v21 }
 0x166   :  { %v506_v22 = vpop.permute.xlu2 %505 }
 0x167   :  { %v2222_v55 = vmul.f32 %v506_v22, %v459_v54 }
 0x16e   :  { %v491_v61 = vpop.permute.xlu2 %490 }
 0x16f   :  { %v536_v44 = vpop.permute.xlu1 %535  ;;  %v546_v45 = vpop.permute.xlu0 %545 }
 0x170   :  { %v2163_v47 = vmul.f32 %v546_v45, %v467_v40  ;;  %v2183_v28 = vmul.f32 %v536_v44, %v465_v59  ;;  %v1357_v40 = vsel %vm409_vm9, 1.0, %v1876_v53  ;;  %v388_v44 = vadd.s32 16, %v2148_v49 }
 0x171   :  { %v1356_v45 = vsel %vm408_vm11, 1.0, %v1876_v53  ;;  %v457_v26 = vsub.f32 %v1964_v5, %v1357_v40 }
 0x172   :  { %v579_v56 = vmul.f32 0.025, %v2163_v47  ;;  %v577_v37 = vmul.f32 0.025, %v2183_v28  ;;  %v456_v58 = vsub.f32 %v1959_v4, %v1356_v45  ;;  %vm406_vm12 = vcmp.eq.s32.totalorder %v388_v44, %v2150_v50 }
 0x174   :  { %580 = vmatpush.msrb.mxu2 %v579_v56  ;;  %v2239_v19 = vmul.f32 %v491_v61, %v456_v58 }
 0x176   :  { %v476_v34 = vpop.permute.xlu2 %475  ;;  %v568_v23 = vmul.f32 0.025, %v2239_v19 }
 0x177   :  { %v531_v17 = vpop.permute.xlu1 %530  ;;  %v541_v18 = vpop.permute.xlu0 %540 }
 0x178   :  { %v2185_v29 = vmul.f32 %v541_v18, %v466_v27  ;;  %v2191_v32 = vmul.f32 %v531_v17, %v464_v16  ;;  %v571_v16 = vmul.f32 0.025, %v2222_v55  ;;  %v1354_v17 = vsel %vm406_vm12, 1.0, %v1876_v53 }
 0x179   :  { %v1355_v18 = vsel %vm407_vm13, 1.0, %v1876_v53  ;;  %v454_v22 = vsub.f32 %v1949_v2, %v1354_v17 }
 0x17a   :  { %v578_v33 = vmul.f32 0.025, %v2185_v29  ;;  %v576_v48 = vmul.f32 0.025, %v2191_v32 }
 0x17c   :  { %581 = vmatpush.msrb.mxu2 %v578_v33  ;;  %v455_v33 = vsub.f32 %v1954_v3, %v1355_v18 }
 0x17e   :  { %582 = vmatpush.msrb.mxu2 %v577_v37 }
 0x17f   :  { %v511_v51 = vpop.permute.xlu1 %510  ;;  %v516_v52 = vpop.permute.xlu0 %515 }
 0x180   :  { %v2210_v20 = vmul.f32 %v516_v52, %v461_v38  ;;  %583 = vmatpush.msrb.mxu2 %v576_v48  ;;  %v2215_v42 = vmul.f32 %v511_v51, %v460_v24  ;;  %v1352_v48 = vsel %vm404_vm15, 1.0, %v1876_v53  ;;  %v2255_v51 = vmul.f32 %v476_v34, %v453_v35 }
 0x182   :  { %584 = vmatpush.msrb.mxu2 %v575_v25  ;;  %v573_v56 = vmul.f32 0.025, %v2210_v20  ;;  %v572_v59 = vmul.f32 0.025, %v2215_v42  ;;  %v452_v25 = vsub.f32 %v1939_v0, %v1352_v48  ;;  %v565_v49 = vmul.f32 0.025, %v2255_v51 }
 0x184   :  { %585 = vmatpush.msrb.mxu2 %v574_v43 }
 0x186   :  { %586 = vmatpush.msrb.mxu2 %v573_v56 }
 0x187   :  { %v496_v27 = vpop.permute.xlu1 %495  ;;  %v501_v60 = vpop.permute.xlu0 %500 }
 0x188   :  { %v2232_v62 = vmul.f32 %v496_v27, %v457_v26  ;;  %v2234_v63 = vmul.f32 %v501_v60, %v458_v57  ;;  %587 = vmatpush.msrb.mxu2 %v572_v59 }
 0x18a   :  { %588 = vmatpush.msrb.mxu2 %v571_v16  ;;  %v570_v30 = vmul.f32 0.025, %v2234_v63  ;;  %v569_v31 = vmul.f32 0.025, %v2232_v62 }
 0x18c   :  { %589 = vmatpush.msrb.mxu2 %v570_v30 }
 0x18e   :  { %590 = vmatpush.msrb.mxu2 %v569_v31 }
 0x18f   :  { %v481_v37 = vpop.permute.xlu1 %480  ;;  %v486_v38 = vpop.permute.xlu0 %485 }
 0x190   :  { %v2250_v39 = vmul.f32 %v481_v37, %v454_v22  ;;  %v2252_v24 = vmul.f32 %v486_v38, %v455_v33  ;;  %591 = vmatpush.msrb.mxu2 %v568_v23 }
 0x192   :  { %v567_v52 = vmul.f32 0.025, %v2252_v24  ;;  %v566_v54 = vmul.f32 0.025, %v2250_v39 }
 0x194   :  { %592 = vmatpush.msrb.mxu2 %v567_v52 }
 0x196   :  { %593 = vmatpush.msrb.mxu2 %v566_v54 }
 0x197   :  { %v471_v50 = vpop.permute.xlu0 %470 }
 0x198   :  { %v2261_v40 = vmul.f32 %v471_v50, %v452_v25  ;;  %594 = vmatpush.msrb.mxu2 %v565_v49 }
 0x19a   :  { %v564_v41 = vmul.f32 0.025, %v2261_v40 }
 0x19c   :  { %595 = vmatpush.msrb.mxu2 %v564_v41  ;;  %v2280_v17 = vpop.f32.mrf.mxu3 }
 0x19d   :  { %596 = vmatmul.f32.vlgmr.msrb.gmra.mxu2 %v2261_v40 }
 0x1a4   :  { %v2287_v37 = vpop.f32.mrf.mxu3 }
 0x1a5   :  { %599 = vmatmul.f32.gmra.mxu2 %v2255_v51 }
 0x1ad   :  { %602 = vmatmul.f32.gmra.mxu2 %v2250_v39 }
 0x1b5   :  { %605 = vmatmul.f32.gmra.mxu2 %v2252_v24 }
 0x1bd   :  { %608 = vmatmul.f32.gmra.mxu2 %v2239_v19 }
 0x1c5   :  { %611 = vmatmul.f32.gmra.mxu2 %v2232_v62 }
 0x1cd   :  { %614 = vmatmul.f32.gmra.mxu2 %v2234_v63 }
 0x1d5   :  { %617 = vmatmul.f32.gmra.mxu2 %v2222_v55 }
 0x1dd   :  { %620 = vmatmul.f32.gmra.mxu2 %v2215_v42 }
 0x1e5   :  { %623 = vmatmul.f32.gmra.mxu2 %v2210_v20 }
 0x1ed   :  { %626 = vmatmul.f32.gmra.mxu2 %v2203_v7 }
 0x1f5   :  { %629 = vmatmul.f32.gmra.mxu2 %v2196_v36 }
 0x1fd   :  { %632 = vmatmul.f32.gmra.mxu2 %v2191_v32 }
 0x205   :  { %635 = vmatmul.f32.gmra.mxu2 %v2183_v28 }
 0x20d   :  { %638 = vmatmul.f32.gmra.mxu2 %v2185_v29 }
 0x215   :  { %641 = vmatmul.f32.gmra.mxu2 %v2163_v47 }
 0x220   :  { %v597_v53 = vpop.f32.mrf.mxu2 }
 0x228   :  { %v600_v43 = vpop.f32.mrf.mxu2 }
 0x230   :  { %v603_v44 = vpop.f32.mrf.mxu2 }
 0x238   :  { %v606_v15 = vpop.f32.mrf.mxu2 }
 0x240   :  { %v609_v45 = vpop.f32.mrf.mxu2 }
 0x248   :  { %v612_v46 = vpop.f32.mrf.mxu2 }
 0x250   :  { %v615_v61 = vpop.f32.mrf.mxu2 }
 0x258   :  { %v618_v56 = vpop.f32.mrf.mxu2 }
 0x259   :  { %v652_v50 = vadd.f32 %v618_v56, %v2222_v55 }
 0x260   :  { %v621_v26 = vpop.f32.mrf.mxu2 }
 0x261   :  { %v653_v25 = vadd.f32 %v621_v26, %v2215_v42  ;;  %v648_v26 = vadd.f32 %v606_v15, %v2252_v24 }
 0x268   :  { %v624_v57 = vpop.f32.mrf.mxu2 }
 0x269   :  { %v654_v52 = vadd.f32 %v624_v57, %v2210_v20  ;;  %v649_v57 = vadd.f32 %v609_v45, %v2239_v19 }
 0x26b   :  { %v670_v41 = vmul.f32 0.033333335, %v654_v52  ;;  %v337_v52 = vpop.f32.mrf.mxu1 }
 0x270   :  { %v627_v58 = vpop.f32.mrf.mxu2 }
 0x271   :  { %v655_v38 = vadd.f32 %v627_v58, %v2203_v7  ;;  %v650_v58 = vadd.f32 %v612_v46, %v2232_v62  ;;  %v645_v46 = vadd.f32 %v597_v53, %v2261_v40  ;;  %v1628_v53 = vld [vmem:[%s2863_s3] ss:$0 sm:$0xff]  ;;  %s2565_s3 = smov 0  }
 0x273   :  { %v671_v49 = vmul.f32 0.033333335, %v655_v38 }
 0x278   :  { %v630_v59 = vpop.f32.mrf.mxu2 }
 0x279   :  { %v656_v35 = vadd.f32 %v630_v59, %v2196_v36  ;;  %v367_v59 = vpop.f32.mrf.mxu3 }
 0x27b   :  { %v672_v54 = vmul.f32 0.033333335, %v656_v35  ;;  %v661_v35 = vmul.f32 0.033333335, %v645_v46 }
 0x280   :  { %v633_v27 = vpop.f32.mrf.mxu2 }
 0x281   :  { %v657_v33 = vadd.f32 %v633_v27, %v2191_v32  ;;  %v651_v27 = vadd.f32 %v615_v61, %v2234_v63  ;;  %v370_v56 = vpop.f32.mrf.mxu3  ;;  %v646_v61 = vadd.f32 %v600_v43, %v2255_v51 }
 0x283   :  { %v673_v48 = vmul.f32 0.033333335, %v657_v33  ;;  %v662_v45 = vmul.f32 0.033333335, %v646_v61  ;;  %v2360_v61 = vadd.f32 %v1628_v53, %v337_v52  }
 0x288   :  { %v636_v60 = vpop.f32.mrf.mxu2 }
 0x289   :  { %v658_v31 = vadd.f32 %v636_v60, %v2183_v28  ;;  %v669_v60 = vmul.f32 0.033333335, %v653_v25  ;;  %v2319_v25 = vadd.f32 %v1628_v53, %v370_v56  }
 0x28b   :  { %v674_v23 = vmul.f32 0.033333335, %v658_v31  ;;  %v665_v31 = vmul.f32 0.033333335, %v649_v57 }
 0x290   :  { %v639_v16 = vpop.f32.mrf.mxu2 }
 0x291   :  { %v659_v30 = vadd.f32 %v639_v16, %v2185_v29  ;;  %v668_v16 = vmul.f32 0.033333335, %v652_v50  ;;  %v2326_v50 = vadd.f32 %v1628_v53, %v2287_v37  }
 0x293   :  { %v675_v34 = vmul.f32 0.033333335, %v659_v30  ;;  %v666_v30 = vmul.f32 0.033333335, %v650_v58 }
 0x298   :  { %v642_v18 = vpop.f32.mrf.mxu2 }
 0x299   :  { %v660_v21 = vadd.f32 %v642_v18, %v2163_v47  ;;  %v667_v18 = vmul.f32 0.033333335, %v651_v27  ;;  %v2330_v27 = vadd.f32 %v1628_v53, %v2280_v17  }
 0x29b   :  { %v676_v22 = vmul.f32 0.033333335, %v660_v21  ;;  %v647_v21 = vadd.f32 %v603_v44, %v2250_v39 }
 0x29d   :  { %677 = vmatpush.msrb.mxu3 %v676_v22  ;;  %v664_v22 = vmul.f32 0.033333335, %v648_v26  ;;  %v663_v33 = vmul.f32 0.033333335, %v647_v21 }
 0x29f   :  { %678 = vmatpush.msrb.mxu3 %v675_v34  ;;  %v373_v34 = vpop.f32.mrf.mxu3 }
 0x2a1   :  { %679 = vmatpush.msrb.mxu3 %v674_v23 }
 0x2a3   :  { %680 = vmatpush.msrb.mxu3 %v673_v48 }
 0x2a5   :  { %681 = vmatpush.msrb.mxu3 %v672_v54  ;;  %v2315_v54 = vadd.f32 %v1628_v53, %v373_v34  }
 0x2a7   :  { %682 = vmatpush.msrb.mxu3 %v671_v49  ;;  %v376_v15 = vpop.f32.mrf.mxu3  ;;  %v2323_v49 = vadd.f32 %v1628_v53, %v367_v59  }
 0x2a8   :  { %v2313_v48 = vadd.f32 %v1628_v53, %v376_v15  }
 0x2a9   :  { %683 = vmatpush.msrb.mxu3 %v670_v41  ;;  %v340_v41 = vpop.f32.mrf.mxu1 }
 0x2ab   :  { %684 = vmatpush.msrb.mxu3 %v669_v60 }
 0x2ad   :  { %685 = vmatpush.msrb.mxu3 %v668_v16 }
 0x2af   :  { %686 = vmatpush.msrb.mxu3 %v667_v18  ;;  %v379_v44 = vpop.f32.mrf.mxu3 }
 0x2b0   :  { %v2306_v23 = vadd.f32 %v1628_v53, %v379_v44  }
 0x2b1   :  { %687 = vmatpush.msrb.mxu3 %v666_v30  ;;  %v343_v60 = vpop.f32.mrf.mxu1 }
 0x2b2   :  { %v2354_v21 = vadd.f32 %v1628_v53, %v343_v60  }
 0x2b3   :  { %688 = vmatpush.msrb.mxu3 %v665_v31  ;;  %v2357_v31 = vadd.f32 %v1628_v53, %v340_v41  }
 0x2b5   :  { %689 = vmatpush.msrb.mxu3 %v664_v22 }
 0x2b7   :  { %690 = vmatpush.msrb.mxu3 %v663_v33  ;;  %v382_v43 = vpop.f32.mrf.mxu3 }
 0x2b8   :  { %v2308_v38 = vadd.f32 %v1628_v53, %v382_v43  }
 0x2b9   :  { %691 = vmatpush.msrb.mxu3 %v662_v45  ;;  %v346_v59 = vpop.f32.mrf.mxu1 }
 0x2ba   :  { %774 = vmatpush.msrb.mxu0 %v2308_v38  ;;  %v2350_v56 = vadd.f32 %v1628_v53, %v346_v59  }
 0x2bb   :  { %692 = vmatpush.msrb.mxu3 %v661_v35 }
 0x2bc   :  { %693 = vmatmul.f32.vlgmr.msrb.gmra.mxu3 %v2261_v40  ;;  %775 = vmatpush.msrb.mxu0 %v2306_v23 }
 0x2be   :  { %776 = vmatpush.msrb.mxu0 %v2313_v48 }
 0x2c0   :  { %777 = vmatpush.msrb.mxu0 %v2315_v54 }
 0x2c1   :  { %v349_v37 = vpop.f32.mrf.mxu1 }
 0x2c2   :  { %778 = vmatpush.msrb.mxu0 %v2319_v25  ;;  %v2347_v30 = vadd.f32 %v1628_v53, %v349_v37  }
 0x2c4   :  { %696 = vmatmul.f32.gmra.mxu3 %v2255_v51  ;;  %779 = vmatpush.msrb.mxu0 %v2323_v49 }
 0x2c6   :  { %780 = vmatpush.msrb.mxu0 %v2326_v50 }
 0x2c8   :  { %781 = vmatpush.msrb.mxu0 %v2330_v27 }
 0x2c9   :  { %v352_v58 = vpop.f32.mrf.mxu1 }
 0x2ca   :  { %v2344_v26 = vadd.f32 %v1628_v53, %v352_v58  }
 0x2cc   :  { %699 = vmatmul.f32.gmra.mxu3 %v2250_v39 }
 0x2d1   :  { %v355_v17 = vpop.f32.mrf.mxu1 }
 0x2d2   :  { %v2340_v57 = vadd.f32 %v1628_v53, %v355_v17  }
 0x2d4   :  { %702 = vmatmul.f32.gmra.mxu3 %v2252_v24 }
 0x2d9   :  { %v358_v16 = vpop.f32.mrf.mxu1 }
 0x2da   :  { %v2342_v18 = vadd.f32 %v1628_v53, %v358_v16  }
 0x2dc   :  { %705 = vmatmul.f32.gmra.mxu3 %v2239_v19  ;;  %782 = vmatpush.msrb.mxu0 %v2342_v18 }
 0x2de   :  { %783 = vmatpush.msrb.mxu0 %v2340_v57 }
 0x2e0   :  { %784 = vmatpush.msrb.mxu0 %v2344_v26 }
 0x2e2   :  { %785 = vmatpush.msrb.mxu0 %v2347_v30 }
 0x2e4   :  { %708 = vmatmul.f32.gmra.mxu3 %v2232_v62  ;;  %786 = vmatpush.msrb.mxu0 %v2350_v56 }
 0x2e6   :  { %787 = vmatpush.msrb.mxu0 %v2354_v21 }
 0x2e8   :  { %788 = vmatpush.msrb.mxu0 %v2357_v31 }
 0x2ea   :  { %789 = vmatpush.msrb.mxu0 %v2360_v61 }
 0x2ec   :  { %711 = vmatmul.f32.gmra.mxu3 %v2234_v63 }
 0x2f4   :  { %714 = vmatmul.f32.gmra.mxu3 %v2222_v55 }
 0x2fc   :  { %717 = vmatmul.f32.gmra.mxu3 %v2215_v42 }
 0x304   :  { %720 = vmatmul.f32.gmra.mxu3 %v2210_v20 }
 0x30c   :  { %723 = vmatmul.f32.gmra.mxu3 %v2203_v7 }
 0x314   :  { %726 = vmatmul.f32.gmra.mxu3 %v2196_v36 }
 0x31c   :  { %729 = vmatmul.f32.gmra.mxu3 %v2191_v32 }
 0x324   :  { %732 = vmatmul.f32.gmra.mxu3 %v2183_v28 }
 0x32c   :  { %735 = vmatmul.f32.gmra.mxu3 %v2185_v29 }
 0x334   :  { %738 = vmatmul.f32.gmra.mxu3 %v2163_v47 }
 0x33f   :  { %v694_v22 = vpop.f32.mrf.mxu3 }
 0x340   :  { %v742_v46 = vadd.f32 %v694_v22, %v2261_v40 }
 0x342   :  { %v2370_v33 = vmul.f32 0.05, %v742_v46 }
 0x344   :  { %790 = vmatmul.f32.vlgmr.msrb.gmra.mxu0 %v2370_v33 }
 0x347   :  { %v697_v45 = vpop.f32.mrf.mxu3 }
 0x348   :  { %v743_v34 = vadd.f32 %v697_v45, %v2255_v51 }
 0x34a   :  { %v2374_v35 = vmul.f32 0.05, %v743_v34 }
 0x34c   :  { %793 = vmatmul.f32.gmra.mxu0 %v2374_v35 }
 0x34f   :  { %v700_v15 = vpop.f32.mrf.mxu3 }
 0x350   :  { %v744_v44 = vadd.f32 %v700_v15, %v2250_v39 }
 0x352   :  { %v2378_v53 = vmul.f32 0.05, %v744_v44 }
 0x354   :  { %796 = vmatmul.f32.gmra.mxu0 %v2378_v53 }
 0x357   :  { %v703_v43 = vpop.f32.mrf.mxu3 }
 0x358   :  { %v745_v52 = vadd.f32 %v703_v43, %v2252_v24 }
 0x35a   :  { %v2382_v41 = vmul.f32 0.05, %v745_v52 }
 0x35c   :  { %799 = vmatmul.f32.gmra.mxu0 %v2382_v41 }
 0x35f   :  { %v706_v60 = vpop.f32.mrf.mxu3 }
 0x360   :  { %v746_v59 = vadd.f32 %v706_v60, %v2239_v19 }
 0x362   :  { %v2386_v37 = vmul.f32 0.05, %v746_v59 }
 0x364   :  { %802 = vmatmul.f32.gmra.mxu0 %v2386_v37 }
 0x367   :  { %v709_v58 = vpop.f32.mrf.mxu3 }
 0x368   :  { %v747_v17 = vadd.f32 %v709_v58, %v2232_v62 }
 0x36a   :  { %v763_v16 = vmul.f32 0.05, %v747_v17 }
 0x36c   :  { %805 = vmatmul.f32.gmra.mxu0 %v763_v16 }
 0x36f   :  { %v712_v22 = vpop.f32.mrf.mxu3 }
 0x370   :  { %v748_v46 = vadd.f32 %v712_v22, %v2234_v63 }
 0x372   :  { %v764_v45 = vmul.f32 0.05, %v748_v46 }
 0x374   :  { %808 = vmatmul.f32.gmra.mxu0 %v764_v45 }
 0x377   :  { %v715_v34 = vpop.f32.mrf.mxu3 }
 0x378   :  { %v749_v15 = vadd.f32 %v715_v34, %v2222_v55 }
 0x37a   :  { %v765_v44 = vmul.f32 0.05, %v749_v15 }
 0x37c   :  { %811 = vmatmul.f32.gmra.mxu0 %v765_v44 }
 0x37f   :  { %v718_v43 = vpop.f32.mrf.mxu3 }
 0x380   :  { %v750_v52 = vadd.f32 %v718_v43, %v2215_v42 }
 0x382   :  { %v766_v60 = vmul.f32 0.05, %v750_v52 }
 0x384   :  { %814 = vmatmul.f32.gmra.mxu0 %v766_v60 }
 0x387   :  { %v721_v59 = vpop.f32.mrf.mxu3 }
 0x388   :  { %v751_v58 = vadd.f32 %v721_v59, %v2210_v20 }
 0x38a   :  { %v767_v17 = vmul.f32 0.05, %v751_v58 }
 0x38c   :  { %817 = vmatmul.f32.gmra.mxu0 %v767_v17 }
 0x38f   :  { %v724_v6 = vpop.f32.mrf.mxu3 }
 0x390   :  { %v752_v22 = vadd.f32 %v724_v6, %v2203_v7 }
 0x392   :  { %v768_v46 = vmul.f32 0.05, %v752_v22 }
 0x394   :  { %820 = vmatmul.f32.gmra.mxu0 %v768_v46 }
 0x397   :  { %v727_v14 = vpop.f32.mrf.mxu3 }
 0x398   :  { %v753_v34 = vadd.f32 %v727_v14, %v2196_v36 }
 0x39a   :  { %v769_v15 = vmul.f32 0.05, %v753_v34 }
 0x39c   :  { %823 = vmatmul.f32.gmra.mxu0 %v769_v15 }
 0x39f   :  { %v730_v5 = vpop.f32.mrf.mxu3 }
 0x3a0   :  { %v754_v43 = vadd.f32 %v730_v5, %v2191_v32 }
 0x3a2   :  { %v770_v52 = vmul.f32 0.05, %v754_v43 }
 0x3a4   :  { %826 = vmatmul.f32.gmra.mxu0 %v770_v52 }
 0x3a7   :  { %v733_v13 = vpop.f32.mrf.mxu3 }
 0x3a8   :  { %v755_v59 = vadd.f32 %v733_v13, %v2183_v28 }
 0x3aa   :  { %v771_v58 = vmul.f32 0.05, %v755_v59 }
 0x3ac   :  { %829 = vmatmul.f32.gmra.mxu0 %v771_v58 }
 0x3af   :  { %v736_v4 = vpop.f32.mrf.mxu3 }
 0x3b0   :  { %v756_v6 = vadd.f32 %v736_v4, %v2185_v29 }
 0x3b2   :  { %v772_v22 = vmul.f32 0.05, %v756_v6 }
 0x3b4   :  { %832 = vmatmul.f32.gmra.mxu0 %v772_v22 }
 0x3b7   :  { %v739_v12 = vpop.f32.mrf.mxu3 }
 0x3b8   :  { %v757_v14 = vadd.f32 %v739_v12, %v2163_v47 }
 0x3ba   :  { %v773_v34 = vmul.f32 0.05, %v757_v14 }
 0x3bc   :  { %835 = vmatmul.f32.gmra.mxu0 %v773_v34  ;;  %871 = vmatpush.msrb.mxu1 %v773_v34 }
 0x3be   :  { %872 = vmatpush.msrb.mxu1 %v772_v22 }
 0x3c0   :  { %873 = vmatpush.msrb.mxu1 %v771_v58 }
 0x3c1   :  { %v791_v5 = vpop.f32.mrf.mxu0 }
 0x3c2   :  { %v839_v43 = vadd.f32 %v791_v5, %v2360_v61  ;;  %874 = vmatpush.msrb.mxu1 %v770_v52 }
 0x3c4   :  { %v2401_v13 = vmul.f32 0.1, %v839_v43  ;;  %875 = vmatpush.msrb.mxu1 %v769_v15 }
 0x3c6   :  { %876 = vmatpush.msrb.mxu1 %v768_v46 }
 0x3c8   :  { %877 = vmatpush.msrb.mxu1 %v767_v17 }
 0x3c9   :  { %v794_v4 = vpop.f32.mrf.mxu0 }
 0x3ca   :  { %v840_v59 = vadd.f32 %v794_v4, %v2357_v31  ;;  %878 = vmatpush.msrb.mxu1 %v766_v60 }
 0x3cc   :  { %v2404_v6 = vmul.f32 0.1, %v840_v59  ;;  %879 = vmatpush.msrb.mxu1 %v765_v44 }
 0x3ce   :  { %880 = vmatpush.msrb.mxu1 %v764_v45 }
 0x3d0   :  { %881 = vmatpush.msrb.mxu1 %v763_v16 }
 0x3d1   :  { %v797_v12 = vpop.f32.mrf.mxu0 }
 0x3d2   :  { %v841_v58 = vadd.f32 %v797_v12, %v2354_v21  ;;  %882 = vmatpush.msrb.mxu1 %v2386_v37 }
 0x3d4   :  { %v2408_v52 = vmul.f32 0.1, %v841_v58  ;;  %883 = vmatpush.msrb.mxu1 %v2382_v41 }
 0x3d6   :  { %884 = vmatpush.msrb.mxu1 %v2378_v53 }
 0x3d8   :  { %885 = vmatpush.msrb.mxu1 %v2374_v35 }
 0x3d9   :  { %v800_v17 = vpop.f32.mrf.mxu0 }
 0x3da   :  { %v842_v60 = vadd.f32 %v800_v17, %v2350_v56  ;;  %886 = vmatpush.msrb.mxu1 %v2370_v33 }
 0x3db   :  { %887 = vmatmul.f32.vlgmr.msrb.gmra.mxu1 %v2261_v40 }
 0x3dc   :  { %v2416_v16 = vmul.f32 0.1, %v842_v60 }
 0x3e1   :  { %v803_v45 = vpop.f32.mrf.mxu0 }
 0x3e2   :  { %v843_v37 = vadd.f32 %v803_v45, %v2347_v30 }
 0x3e3   :  { %890 = vmatmul.f32.gmra.mxu1 %v2255_v51 }
 0x3e4   :  { %v2420_v44 = vmul.f32 0.1, %v843_v37 }
 0x3e9   :  { %v806_v41 = vpop.f32.mrf.mxu0 }
 0x3ea   :  { %v844_v53 = vadd.f32 %v806_v41, %v2344_v26 }
 0x3eb   :  { %893 = vmatmul.f32.gmra.mxu1 %v2250_v39 }
 0x3ec   :  { %v2424_v35 = vmul.f32 0.1, %v844_v53 }
 0x3f1   :  { %v809_v46 = vpop.f32.mrf.mxu0 }
 0x3f2   :  { %v845_v33 = vadd.f32 %v809_v46, %v2340_v57 }
 0x3f3   :  { %896 = vmatmul.f32.gmra.mxu1 %v2252_v24 }
 0x3f4   :  { %v2428_v15 = vmul.f32 0.1, %v845_v33 }
 0x3f9   :  { %v812_v22 = vpop.f32.mrf.mxu0 }
 0x3fa   :  { %v846_v14 = vadd.f32 %v812_v22, %v2342_v18 }
 0x3fb   :  { %899 = vmatmul.f32.gmra.mxu1 %v2239_v19 }
 0x3fc   :  { %v2432_v34 = vmul.f32 0.1, %v846_v14 }
 0x401   :  { %v815_v5 = vpop.f32.mrf.mxu0 }
 0x402   :  { %v847_v43 = vadd.f32 %v815_v5, %v2330_v27 }
 0x403   :  { %902 = vmatmul.f32.gmra.mxu1 %v2232_v62 }
 0x404   :  { %v2436_v4 = vmul.f32 0.1, %v847_v43 }
 0x406   :  { %2906 = vst [vmem:[#allocation32_spill] sm:$0xff] %v2436_v4 }
 0x409   :  { %v818_v59 = vpop.f32.mrf.mxu0 }
 0x40a   :  { %v848_v12 = vadd.f32 %v818_v59, %v2326_v50 }
 0x40b   :  { %905 = vmatmul.f32.gmra.mxu1 %v2234_v63 }
 0x40c   :  { %v2440_v58 = vmul.f32 0.1, %v848_v12 }
 0x411   :  { %v821_v17 = vpop.f32.mrf.mxu0 }
 0x412   :  { %v849_v60 = vadd.f32 %v821_v17, %v2323_v49 }
 0x413   :  { %908 = vmatmul.f32.gmra.mxu1 %v2222_v55 }
 0x414   :  { %v2444_v45 = vmul.f32 0.1, %v849_v60 }
 0x419   :  { %v824_v37 = vpop.f32.mrf.mxu0 }
 0x41a   :  { %v850_v41 = vadd.f32 %v824_v37, %v2319_v25 }
 0x41b   :  { %911 = vmatmul.f32.gmra.mxu1 %v2215_v42 }
 0x41c   :  { %v2448_v53 = vmul.f32 0.1, %v850_v41 }
 0x421   :  { %v827_v46 = vpop.f32.mrf.mxu0 }
 0x422   :  { %v851_v33 = vadd.f32 %v827_v46, %v2315_v54 }
 0x423   :  { %914 = vmatmul.f32.gmra.mxu1 %v2210_v20 }
 0x424   :  { %v2452_v22 = vmul.f32 0.1, %v851_v33 }
 0x429   :  { %v830_v14 = vpop.f32.mrf.mxu0 }
 0x42a   :  { %v852_v5 = vadd.f32 %v830_v14, %v2313_v48 }
 0x42b   :  { %917 = vmatmul.f32.gmra.mxu1 %v2203_v7 }
 0x42c   :  { %v2456_v43 = vmul.f32 0.1, %v852_v5 }
 0x431   :  { %v833_v59 = vpop.f32.mrf.mxu0 }
 0x432   :  { %v853_v12 = vadd.f32 %v833_v59, %v2306_v23 }
 0x433   :  { %920 = vmatmul.f32.gmra.mxu1 %v2196_v36 }
 0x434   :  { %v2460_v17 = vmul.f32 0.1, %v853_v12 }
 0x439   :  { %v836_v60 = vpop.f32.mrf.mxu0 }
 0x43a   :  { %v854_v37 = vadd.f32 %v836_v60, %v2308_v38 }
 0x43b   :  { %923 = vmatmul.f32.gmra.mxu1 %v2191_v32 }
 0x43c   :  { %v2464_v41 = vmul.f32 0.1, %v854_v37 }
 0x443   :  { %926 = vmatmul.f32.gmra.mxu1 %v2183_v28 }
 0x44b   :  { %929 = vmatmul.f32.gmra.mxu1 %v2185_v29 }
 0x453   :  { %932 = vmatmul.f32.gmra.mxu1 %v2163_v47 }
 0x458   :  { %v888_v46 = vpop.f32.mrf.mxu1 }
 0x459   :  { %v936_v33 = vadd.f32 %v888_v46, %v2261_v40 }
 0x45b   :  { %v2470_v14 = vmul.f32 0.1, %v936_v33 }
 0x460   :  { %v891_v5 = vpop.f32.mrf.mxu1 }
 0x461   :  { %v937_v59 = vadd.f32 %v891_v5, %v2255_v51 }
 0x463   :  { %v2473_v12 = vmul.f32 0.1, %v937_v59 }
 0x468   :  { %v894_v60 = vpop.f32.mrf.mxu1 }
 0x469   :  { %v938_v37 = vadd.f32 %v894_v60, %v2250_v39 }
 0x46b   :  { %v2476_v3 = vmul.f32 0.1, %v938_v37 }
 0x46d   :  { %2907 = vst [vmem:[#allocation33_spill] sm:$0xff] %v2476_v3 }
 0x470   :  { %v897_v11 = vpop.f32.mrf.mxu1 }
 0x471   :  { %v939_v2 = vadd.f32 %v897_v11, %v2252_v24 }
 0x473   :  { %v2479_v10 = vmul.f32 0.1, %v939_v2 }
 0x478   :  { %v900_v1 = vpop.f32.mrf.mxu1 }
 0x479   :  { %v940_v40 = vadd.f32 %v900_v1, %v2239_v19 }
 0x47b   :  { %v2482_v46 = vmul.f32 0.1, %v940_v40 }
 0x480   :  { %v903_v33 = vpop.f32.mrf.mxu1 }
 0x481   :  { %v941_v51 = vadd.f32 %v903_v33, %v2232_v62 }
 0x483   :  { %v2485_v5 = vmul.f32 0.1, %v941_v51 }
 0x488   :  { %v906_v59 = vpop.f32.mrf.mxu1 }
 0x489   :  { %v942_v39 = vadd.f32 %v906_v59, %v2234_v63 }
 0x48b   :  { %v2488_v60 = vmul.f32 0.1, %v942_v39 }
 0x490   :  { %v909_v37 = vpop.f32.mrf.mxu1 }
 0x491   :  { %v943_v11 = vadd.f32 %v909_v37, %v2222_v55 }
 0x493   :  { %v2491_v2 = vmul.f32 0.1, %v943_v11 }
 0x495   :  { %2908 = vst [vmem:[#allocation34_spill] sm:$0xff] %v2491_v2 }
 0x498   :  { %v912_v24 = vpop.f32.mrf.mxu1 }
 0x499   :  { %v944_v1 = vadd.f32 %v912_v24, %v2215_v42 }
 0x49b   :  { %v2494_v19 = vmul.f32 0.1, %v944_v1 }
 0x4a0   :  { %v915_v40 = vpop.f32.mrf.mxu1 }
 0x4a1   :  { %v945_v62 = vadd.f32 %v915_v40, %v2210_v20 }
 0x4a3   :  { %v2497_v33 = vmul.f32 0.1, %v945_v62 }
 0x4a8   :  { %v918_v51 = vpop.f32.mrf.mxu1 }
 0x4a9   :  { %v946_v63 = vadd.f32 %v918_v51, %v2203_v7 }
 0x4ab   :  { %v2500_v59 = vmul.f32 0.1, %v946_v63 }
 0x4b0   :  { %v921_v39 = vpop.f32.mrf.mxu1 }
 0x4b1   :  { %v947_v55 = vadd.f32 %v921_v39, %v2196_v36 }
 0x4b3   :  { %v2503_v37 = vmul.f32 0.1, %v947_v55 }
 0x4b8   :  { %v924_v11 = vpop.f32.mrf.mxu1 }
 0x4b9   :  { %v948_v42 = vadd.f32 %v924_v11, %v2191_v32 }
 0x4bb   :  { %v2506_v24 = vmul.f32 0.1, %v948_v42 }
 0x4c0   :  { %v927_v1 = vpop.f32.mrf.mxu1 }
 0x4c1   :  { %v949_v20 = vadd.f32 %v927_v1, %v2183_v28 }
 0x4c3   :  { %v2509_v40 = vmul.f32 0.1, %v949_v20 }
 0x4c8   :  { %v930_v62 = vpop.f32.mrf.mxu1 }
 0x4c9   :  { %v950_v7 = vadd.f32 %v930_v62, %v2185_v29 }
 0x4cb   :  { %v2512_v51 = vmul.f32 0.1, %v950_v7 }
 0x4d0   :  { %v933_v63 = vpop.f32.mrf.mxu1 }
 0x4d1   :  { %v951_v36 = vadd.f32 %v933_v63, %v2163_v47 }
 0x4d3   :  { %v2515_v39 = vmul.f32 0.1, %v951_v36 }
 0x4d4 LB: > { %1402 = vmatpush.msra.mxu2 %v1804_v38  ;;  %1403 = vmatpush.msra.mxu3 %v1804_v38  ;;  %v2909_v3 = vld [vmem:[#allocation33_spill] sm:$0xff]  ;;  %v2910_v2 = vld [vmem:[#allocation34_spill] sm:$0xff]  ;;  %v2913_v4 = vld [vmem:[#allocation32_spill] sm:$0xff]  ;;  %s973_s3 = sadd.s32 1, %s1868_s3   ;;  %s1868_s3 = sphi %s2565_s3, %s973_s3   ;;  %v1864_v61 = vphi %v2360_v61, %v2949_v61   ;;  %v1860_v31 = vphi %v2357_v31, %v2948_v31   ;;  %v1856_v21 = vphi %v2354_v21, %v2947_v21   ;;  %v1852_v56 = vphi %v2350_v56, %v2946_v56   ;;  %v1848_v30 = vphi %v2347_v30, %v2945_v30   ;;  %v1844_v26 = vphi %v2344_v26, %v2944_v26   ;;  %v1840_v57 = vphi %v2340_v57, %v2943_v57   ;;  %v1836_v18 = vphi %v2342_v18, %v2942_v18   ;;  %v1832_v27 = vphi %v2330_v27, %v2940_v27   ;;  %v1828_v50 = vphi %v2326_v50, %v2939_v50   ;;  %v1824_v49 = vphi %v2323_v49, %v2938_v49   ;;  %v1820_v25 = vphi %v2319_v25, %v2937_v25   ;;  %v1816_v54 = vphi %v2315_v54, %v2936_v54   ;;  %v1812_v48 = vphi %v2313_v48, %v2935_v48   ;;  %v1808_v23 = vphi %v2306_v23, %v2934_v23   ;;  %v1804_v38 = vphi %v2308_v38, %v2933_v38  }
 0x4d5   : > { %990 = vmatpush.msra.mxu0 %v1804_v38  ;;  %1401 = vmatpush.msra.mxu1 %v1804_v38  ;;  %p2763_p0 = scmp.ge.s32.totalorder %s973_s3, 10  }
 0x4d6   : > { %1405 = vmatpush.msra.mxu2 %v1808_v23  ;;  %1406 = vmatpush.msra.mxu3 %v1808_v23  ;;  %v1117_v9 = vld [vmem:[#allocation9 + $0x70] sm:$0xff] (%p2763_p0)  ;;  %v1116_v0 = vld [vmem:[#allocation9 + $0x68] sm:$0xff] (%p2763_p0)  ;;  %v1115_v8 = vld [vmem:[#allocation9 + $0x60] sm:$0xff] (%p2763_p0)  ;;  %s1275_s2 = sshll.u32 (%p2763_p0), %s2867_s7, 4  ;;  %s1276_s2 = int_to_ptr.hbm [resolvable:$true] %s1275_s2 }
 0x4d7   : > { %991 = vmatpush.msra.mxu0 %v1808_v23  ;;  %1404 = vmatpush.msra.mxu1 %v1808_v23 }
 0x4d8   : > { %1408 = vmatpush.msra.mxu2 %v1812_v48  ;;  %1409 = vmatpush.msra.mxu3 %v1812_v48 }
 0x4d9   : > { %992 = vmatpush.msra.mxu0 %v1812_v48  ;;  %1407 = vmatpush.msra.mxu1 %v1812_v48 }
 0x4da   : > { %1411 = vmatpush.msra.mxu2 %v1816_v54  ;;  %1412 = vmatpush.msra.mxu3 %v1816_v54 }
 0x4db   : > { %993 = vmatpush.msra.mxu0 %v1816_v54  ;;  %1410 = vmatpush.msra.mxu1 %v1816_v54 }
 0x4dc   : > { %1414 = vmatpush.msra.mxu2 %v1820_v25  ;;  %1415 = vmatpush.msra.mxu3 %v1820_v25 }
 0x4dd   : > { %994 = vmatpush.msra.mxu0 %v1820_v25  ;;  %1413 = vmatpush.msra.mxu1 %v1820_v25 }
 0x4de   : > { %1417 = vmatpush.msra.mxu2 %v1824_v49  ;;  %1418 = vmatpush.msra.mxu3 %v1824_v49 }
 0x4df   : > { %995 = vmatpush.msra.mxu0 %v1824_v49  ;;  %1416 = vmatpush.msra.mxu1 %v1824_v49 }
 0x4e0   : > { %1420 = vmatpush.msra.mxu2 %v1828_v50  ;;  %1421 = vmatpush.msra.mxu3 %v1828_v50 }
 0x4e1   : > { %996 = vmatpush.msra.mxu0 %v1828_v50  ;;  %1419 = vmatpush.msra.mxu1 %v1828_v50 }
 0x4e2   : > { %1423 = vmatpush.msra.mxu2 %v1832_v27  ;;  %1424 = vmatpush.msra.mxu3 %v1832_v27 }
 0x4e3   : > { %997 = vmatpush.msra.mxu0 %v1832_v27  ;;  %1422 = vmatpush.msra.mxu1 %v1832_v27 }
 0x4e4   : > { %1426 = vmatpush.msra.mxu2 %v1836_v18  ;;  %1427 = vmatpush.msra.mxu3 %v1836_v18 }
 0x4e5   : > { %998 = vmatpush.msra.mxu0 %v1836_v18  ;;  %1425 = vmatpush.msra.mxu1 %v1836_v18 }
 0x4e6   : > { %1429 = vmatpush.msra.mxu2 %v1840_v57  ;;  %1430 = vmatpush.msra.mxu3 %v1840_v57 }
 0x4e7   : > { %999 = vmatpush.msra.mxu0 %v1840_v57  ;;  %1428 = vmatpush.msra.mxu1 %v1840_v57 }
 0x4e8   : > { %1432 = vmatpush.msra.mxu2 %v1844_v26  ;;  %1433 = vmatpush.msra.mxu3 %v1844_v26 }
 0x4e9   : > { %1000 = vmatpush.msra.mxu0 %v1844_v26  ;;  %1431 = vmatpush.msra.mxu1 %v1844_v26 }
 0x4ea   : > { %1435 = vmatpush.msra.mxu2 %v1848_v30  ;;  %1436 = vmatpush.msra.mxu3 %v1848_v30 }
 0x4eb   : > { %1001 = vmatpush.msra.mxu0 %v1848_v30  ;;  %1434 = vmatpush.msra.mxu1 %v1848_v30 }
 0x4ec   : > { %1438 = vmatpush.msra.mxu2 %v1852_v56  ;;  %1439 = vmatpush.msra.mxu3 %v1852_v56 }
 0x4ed   : > { %1002 = vmatpush.msra.mxu0 %v1852_v56  ;;  %1437 = vmatpush.msra.mxu1 %v1852_v56 }
 0x4ee   : > { %1441 = vmatpush.msra.mxu2 %v1856_v21  ;;  %1442 = vmatpush.msra.mxu3 %v1856_v21 }
 0x4ef   : > { %1003 = vmatpush.msra.mxu0 %v1856_v21  ;;  %1440 = vmatpush.msra.mxu1 %v1856_v21 }
 0x4f0   : > { %1444 = vmatpush.msra.mxu2 %v1860_v31  ;;  %1445 = vmatpush.msra.mxu3 %v1860_v31 }
 0x4f1   : > { %1004 = vmatpush.msra.mxu0 %v1860_v31  ;;  %1443 = vmatpush.msra.mxu1 %v1860_v31 }
 0x4f2   : > { %1447 = vmatpush.msra.mxu2 %v1864_v61  ;;  %1448 = vmatpush.msra.mxu3 %v1864_v61 }
 0x4f3   : > { %1030 = vmatmul.f32.vlgmr.msra.gmra.mxu2 %v2494_v19  ;;  %1042 = vmatmul.f32.vlgmr.msra.gmra.mxu3 %v2506_v24 }
 0x4f4   : > { %1005 = vmatpush.msra.mxu0 %v1864_v61  ;;  %1446 = vmatpush.msra.mxu1 %v1864_v61 }
 0x4f5   : > { %1006 = vmatmul.f32.vlgmr.msra.gmra.mxu0 %v2470_v14  ;;  %1018 = vmatmul.f32.vlgmr.msra.gmra.mxu1 %v2482_v46 }
 0x4fb   : > { %1033 = vmatmul.f32.gmra.mxu2 %v2497_v33  ;;  %1045 = vmatmul.f32.gmra.mxu3 %v2509_v40 }
 0x4fd   : > { %1009 = vmatmul.f32.gmra.mxu0 %v2473_v12  ;;  %1021 = vmatmul.f32.gmra.mxu1 %v2485_v5 }
 0x503   : > { %1036 = vmatmul.f32.gmra.mxu2 %v2500_v59  ;;  %1048 = vmatmul.f32.gmra.mxu3 %v2512_v51 }
 0x505   : > { %1012 = vmatmul.f32.gmra.mxu0 %v2909_v3  ;;  %1024 = vmatmul.f32.gmra.mxu1 %v2488_v60 }
 0x50b   : > { %1039 = vmatmul.f32.gmra.mxu2 %v2503_v37  ;;  %1051 = vmatmul.f32.gmra.mxu3 %v2515_v39 }
 0x50d   : > { %1015 = vmatmul.f32.gmra.mxu0 %v2479_v10  ;;  %1027 = vmatmul.f32.gmra.mxu1 %v2910_v2  ;;  %v1110_v10 = vld [vmem:[#allocation9 + $0x38] sm:$0xff] (%p2763_p0) }
 0x572   : > { %v1007_v47 = vpop.f32.mrf.mxu0  ;;  %v1019_v28 = vpop.f32.mrf.mxu1 }
 0x573   : > { %v1055_v29 = vadd.f32 %v1864_v61, %v1007_v47  ;;  %v1059_v32 = vadd.f32 %v1848_v30, %v1019_v28 }
 0x575   : > { %v2701_v61 = vadd.f32 %v1055_v29, %v2401_v13   ;;  %v2704_v30 = vadd.f32 %v1059_v32, %v2420_v44  }
 0x576   : > { %v1031_v42 = vpop.f32.mrf.mxu2  ;;  %v1043_v1 = vpop.f32.mrf.mxu3 }
 0x577   : > { %v2911_v55 = vmov %v2701_v61  ;;  %v2912_v11 = vmov %v2704_v30  ;;  %v1063_v20 = vadd.f32 %v1832_v27, %v1031_v42  ;;  %v1067_v62 = vadd.f32 %v1816_v54, %v1043_v1 }
 0x578   :  { %v1087_v13 = vmax.f32 (%p2763_p0), %v2911_v55, 0.0 }
 0x579   : > { %v2709_v27 = vadd.f32 %v1063_v20, %v2913_v4   ;;  %v2712_v54 = vadd.f32 %v1067_v62, %v2452_v22  }
 0x57a   : > { %v1010_v36 = vpop.f32.mrf.mxu0  ;;  %v1022_v47 = vpop.f32.mrf.mxu1 }
 0x57b   : > { %v2914_v7 = vmov %v2709_v27  ;;  %v2915_v63 = vmov %v2712_v54  ;;  %v1056_v28 = vadd.f32 %v1860_v31, %v1010_v36  ;;  %v1060_v61 = vadd.f32 %v1844_v26, %v1022_v47 }
 0x57d   : > { %v2717_v31 = vadd.f32 %v1056_v28, %v2404_v6   ;;  %v2720_v26 = vadd.f32 %v1060_v61, %v2424_v35  }
 0x57e   : > { %v1034_v30 = vpop.f32.mrf.mxu2  ;;  %v1046_v42 = vpop.f32.mrf.mxu3 }
 0x57f   : > { %v2916_v29 = vmov %v2717_v31  ;;  %v2917_v32 = vmov %v2720_v26  ;;  %v1064_v1 = vadd.f32 %v1828_v50, %v1034_v30  ;;  %v1068_v27 = vadd.f32 %v1812_v48, %v1046_v42 }
 0x581   : > { %v2725_v50 = vadd.f32 %v1064_v1, %v2440_v58   ;;  %v2728_v48 = vadd.f32 %v1068_v27, %v2456_v43  }
 0x582   : > { %v1013_v54 = vpop.f32.mrf.mxu0  ;;  %v1025_v36 = vpop.f32.mrf.mxu1 }
 0x583   : > { %v2918_v20 = vmov %v2725_v50  ;;  %v2919_v62 = vmov %v2728_v48  ;;  %v1057_v47 = vadd.f32 %v1856_v21, %v1013_v54  ;;  %v1061_v31 = vadd.f32 %v1840_v57, %v1025_v36 }
 0x584   :  { %v1096_v6 = vmax.f32 (%p2763_p0), %v2918_v20, 0.0  ;;  %v1100_v58 = vmax.f32 (%p2763_p0), %v2919_v62, 0.0 }
 0x585   : > { %v2733_v21 = vadd.f32 %v1057_v47, %v2408_v52   ;;  %v2736_v57 = vadd.f32 %v1061_v31, %v2428_v15   ;;  %v1088_v52 = vmax.f32 (%p2763_p0), %v2916_v29, 0.0 }
 0x586   : > { %v1037_v26 = vpop.f32.mrf.mxu2  ;;  %v1049_v61 = vpop.f32.mrf.mxu3 }
 0x587   : > { %v2920_v28 = vmov %v2733_v21  ;;  %2921 = vst [vmem:[#allocation35_spill] sm:$0xff] %v2736_v57  ;;  %v2922_v2 = vmov %v2736_v57  ;;  %v1065_v30 = vadd.f32 %v1824_v49, %v1037_v26  ;;  %v1069_v50 = vadd.f32 %v1808_v23, %v1049_v61 }
 0x588   : > { %v2949_v61 = vmov %v2911_v55  ;;  %v1089_v44 = vmax.f32 (%p2763_p0), %v2920_v28, 0.0 }
 0x589   : > { %v2741_v49 = vadd.f32 %v1065_v30, %v2444_v45   ;;  %v2744_v23 = vadd.f32 %v1069_v50, %v2460_v17   ;;  %v2939_v50 = vmov %v2918_v20  ;;  %v2945_v30 = vmov %v2912_v11  ;;  %v1118_v61 = vld [vmem:[#allocation9 + $0x78] sm:$0xff] (%p2763_p0)  ;;  %v2956_v20 = vld [vmem:[#allocation25_spill] sm:$0xff] (%p2763_p0) }
 0x58a   : > { %v1016_v48 = vpop.f32.mrf.mxu0  ;;  %v1028_v27 = vpop.f32.mrf.mxu1  ;;  %1449 = vmatpush.msra.mxu2 (%p2763_p0), %v1118_v61  ;;  %1119 = vmatpush.msra.mxu0 (%p2763_p0), %v1118_v61  ;;  %v1092_v45 = vmax.f32 (%p2763_p0), %v2917_v32, 0.0  ;;  %v2959_v30 = vld [vmem:[#allocation18_spill] sm:$0xff] (%p2763_p0)  ;;  %v2960_v50 = vld [vmem:[#allocation27_spill] sm:$0xff] (%p2763_p0) }
 0x58b   : > { %v2923_v42 = vmov %v2741_v49  ;;  %2924 = vst [vmem:[#allocation36_spill] sm:$0xff] %v2744_v23  ;;  %v2925_v1 = vmov %v2744_v23  ;;  %v1058_v54 = vadd.f32 %v1852_v56, %v1016_v48  ;;  %v1062_v21 = vadd.f32 %v1836_v18, %v1028_v27 }
 0x58c   : > { %v2934_v23 = vmov %v2925_v1  ;;  %v2935_v48 = vmov %v2919_v62  ;;  %v2940_v27 = vmov %v2914_v7  ;;  %1450 = vmatpush.msra.mxu2 (%p2763_p0), %v1117_v9  ;;  %1120 = vmatpush.msra.mxu0 (%p2763_p0), %v1117_v9  ;;  %v1111_v1 = vld [vmem:[#allocation9 + $0x40] sm:$0xff] (%p2763_p0)  ;;  %v1108_v9 = vld [vmem:[#allocation9 + $0x28] sm:$0xff] (%p2763_p0) }
 0x58d   : > { %v2749_v56 = vadd.f32 %v1058_v54, %v2416_v16   ;;  %v2752_v18 = vadd.f32 %v1062_v21, %v2432_v34   ;;  %v2936_v54 = vmov %v2915_v63  ;;  %v2947_v21 = vmov %v2920_v28  ;;  %v1109_v23 = vld [vmem:[#allocation9 + $0x30] sm:$0xff] (%p2763_p0)  ;;  %v2957_v62 = vld [vmem:[#allocation17_spill] sm:$0xff] (%p2763_p0)  ;;  %v2963_v48 = vld [vmem:[#allocation20_spill] sm:$0xff] (%p2763_p0) }
 0x58e   : > { %v1040_v57 = vpop.f32.mrf.mxu2  ;;  %v1052_v31 = vpop.f32.mrf.mxu3  ;;  %1451 = vmatpush.msra.mxu2 (%p2763_p0), %v1116_v0  ;;  %1121 = vmatpush.msra.mxu0 (%p2763_p0), %v1116_v0  ;;  %v1107_v0 = vld [vmem:[#allocation9 + $0x20] sm:$0xff] (%p2763_p0)  ;;  %v1097_v16 = vmax.f32 (%p2763_p0), %v2923_v42, 0.0  ;;  %v1099_v34 = vmax.f32 (%p2763_p0), %v2915_v63, 0.0  ;;  %v2951_v43 = vld [vmem:[#allocation35_spill] sm:$0xff] (%p2763_p0)  ;;  %v2958_v28 = vld [vmem:[#allocation26_spill] sm:$0xff] (%p2763_p0) }
 0x58f   : > { %v2926_v36 = vmov %v2749_v56  ;;  %2927 = vst [vmem:[#allocation37_spill] sm:$0xff] %v2752_v18  ;;  %v1066_v26 = vadd.f32 %v1820_v25, %v1040_v57  ;;  %v1070_v49 = vadd.f32 %v1804_v38, %v1052_v31  ;;  %v2941_v47 = vmov %v2752_v18  ;;  %v2964_v27 = vld [vmem:[#allocation29_spill] sm:$0xff] (%p2763_p0)  ;;  %v2966_v21 = vld [vmem:[#allocation30_spill] sm:$0xff] (%p2763_p0) }
 0x590   : > { %v2942_v18 = vmov %v2941_v47  ;;  %v2943_v57 = vmov %v2922_v2  ;;  %v2946_v56 = vmov %v2926_v36  ;;  %v2948_v31 = vmov %v2916_v29  ;;  %972 = sbr.rel (!%p2763_p0) target bundleno = 1236 (0x4d4), region = 86  ;;  %v1114_v47 = vld [vmem:[#allocation9 + $0x58] sm:$0xff] (%p2763_p0)  ;;  %1452 = vmatpush.msra.mxu2 (%p2763_p0), %v1115_v8  ;;  %1122 = vmatpush.msra.mxu0 (%p2763_p0), %v1115_v8  ;;  %v1112_v2 = vld [vmem:[#allocation9 + $0x48] sm:$0xff] (%p2763_p0)  ;;  %v2954_v29 = vld [vmem:[#allocation24_spill] sm:$0xff] (%p2763_p0) }
 0x591   : > { %v2757_v25 = vadd.f32 %v1066_v26, %v2448_v53   ;;  %v2760_v38 = vadd.f32 %v1070_v49, %v2464_v41   ;;  %v2938_v49 = vmov %v2923_v42  ;;  %v2944_v26 = vmov %v2917_v32  ;;  %v1106_v8 = vld [vmem:[#allocation9 + $0x18] sm:$0xff] (%p2763_p0)  ;;  %v1103_v18 = vld [vmem:[#allocation9] sm:$0xff] (%p2763_p0)  ;;  %v2965_v54 = vld [vmem:[#allocation21_spill] sm:$0xff] (%p2763_p0) }
 0x592   :  { %1453 = vmatpush.msra.mxu2 (%p2763_p0), %v1114_v47  ;;  %1123 = vmatpush.msra.mxu0 (%p2763_p0), %v1114_v47  ;;  %v1095_v56 = vmax.f32 (%p2763_p0), %v2914_v7, 0.0  ;;  %v1090_v15 = vmax.f32 (%p2763_p0), %v2926_v36, 0.0  ;;  %v2950_v53 = vld [vmem:[#allocation36_spill] sm:$0xff] (%p2763_p0)  ;;  %v2961_v42 = vld [vmem:[#allocation19_spill] sm:$0xff] (%p2763_p0)  ;;  %v2967_v36 = vld [vmem:[#allocation22_spill] sm:$0xff] (%p2763_p0) }
 0x593   : > { %v2929_v3 = vmov %v2757_v25  ;;  %2930 = vst [vmem:[#allocation38_spill] sm:$0xff] %v2760_v38  ;;  %v2931_v4 = vmov %v2760_v38  ;;  %v1101_v22 = vmax.f32 (%p2763_p0), %v2950_v53, 0.0  ;;  %v2955_v32 = vld [vmem:[#allocation16_spill] sm:$0xff] (%p2763_p0)  ;;  %v2968_v47 = vld [vmem:[#allocation31_spill] sm:$0xff] (%p2763_p0) }
 0x594   : > { %v2933_v38 = vmov %v2931_v4  ;;  %v2937_v25 = vmov %v2929_v3  ;;  %v1113_v4 = vld [vmem:[#allocation9 + $0x50] sm:$0xff] (%p2763_p0)  ;;  %v1098_v35 = vmax.f32 (%p2763_p0), %v2929_v3, 0.0  ;;  %v1093_v3 = vmax.f32 (%p2763_p0), %v2951_v43, 0.0  ;;  %v2969_v57 = vld [vmem:[#allocation23_spill] sm:$0xff] (%p2763_p0)  ;;  %v1629_v31 = vld [vmem:[%s2865_s5] ss:$0 sm:$0xff] (%p2763_p0) }
 0x595   :  { %1454 = vmatpush.msra.mxu2 %v1113_v4  ;;  %1124 = vmatpush.msra.mxu0 %v1113_v4  ;;  %v1105_v38 = vld [vmem:[#allocation9 + $0x10] sm:$0xff]  ;;  %v1104_v25 = vld [vmem:[#allocation9 + $0x8] sm:$0xff]  ;;  %v1091_v4 = vmax.f32 %v2912_v11, 0.0  ;;  %s1877_s5 = smov [#allocation10]  }
 0x596   :  { %v2953_v14 = vld [vmem:[#allocation37_spill] sm:$0xff]  ;;  %s1273_s12 = sshll.u32 %s1877_s5, 4  ;;  %s1274_s12 = int_to_ptr.vmem [resolvable:$true] %s1273_s12 }
 0x597   :  { %1455 = vmatpush.msra.mxu2 %v1112_v2  ;;  %1125 = vmatpush.msra.mxu0 %v1112_v2  ;;  %v1094_v12 = vmax.f32 %v2953_v14, 0.0 }
 0x599   :  { %1456 = vmatpush.msra.mxu2 %v1111_v1  ;;  %1126 = vmatpush.msra.mxu0 %v1111_v1  ;;  %v2962_v1 = vld [vmem:[#allocation28_spill] sm:$0xff] }
 0x59a   :  { %v2952_v17 = vld [vmem:[#allocation38_spill] sm:$0xff] }
 0x59b   :  { %1457 = vmatpush.msra.mxu2 %v1110_v10  ;;  %1127 = vmatpush.msra.mxu0 %v1110_v10  ;;  %v1102_v41 = vmax.f32 %v2952_v17, 0.0 }
 0x59d   :  { %1458 = vmatpush.msra.mxu2 %v1109_v23  ;;  %1128 = vmatpush.msra.mxu0 %v1109_v23 }
 0x59f   :  { %1459 = vmatpush.msra.mxu2 %v1108_v9  ;;  %1129 = vmatpush.msra.mxu0 %v1108_v9 }
 0x5a1   :  { %1460 = vmatpush.msra.mxu2 %v1107_v0  ;;  %1130 = vmatpush.msra.mxu0 %v1107_v0 }
 0x5a3   :  { %1461 = vmatpush.msra.mxu2 %v1106_v8  ;;  %1131 = vmatpush.msra.mxu0 %v1106_v8 }
 0x5a5   :  { %1462 = vmatpush.msra.mxu2 %v1105_v38  ;;  %1132 = vmatpush.msra.mxu0 %v1105_v38 }
 0x5a7   :  { %1463 = vmatpush.msra.mxu2 %v1104_v25  ;;  %1133 = vmatpush.msra.mxu0 %v1104_v25 }
 0x5a9   :  { %1464 = vmatpush.msra.mxu2 %v1103_v18  ;;  %1134 = vmatpush.msra.mxu0 %v1103_v18 }
 0x5aa   :  { %1159 = vmatmul.f32.vlgmr.msra.gmra.mxu2 %v1095_v56  ;;  %1135 = vmatmul.f32.vlgmr.msra.gmra.mxu0 %v1087_v13 }
 0x5b2   :  { %1162 = vmatmul.f32.gmra.mxu2 %v1096_v6  ;;  %1138 = vmatmul.f32.gmra.mxu0 %v1088_v52 }
 0x5ba   :  { %1165 = vmatmul.f32.gmra.mxu2 %v1097_v16  ;;  %1141 = vmatmul.f32.gmra.mxu0 %v1089_v44 }
 0x5c2   :  { %1168 = vmatmul.f32.gmra.mxu2 %v1098_v35  ;;  %1144 = vmatmul.f32.gmra.mxu0 %v1090_v15 }
 0x5ca   :  { %1171 = vmatmul.f32.gmra.mxu2 %v1099_v34  ;;  %1147 = vmatmul.f32.gmra.mxu0 %v1091_v4 }
 0x5d2   :  { %1174 = vmatmul.f32.gmra.mxu2 %v1100_v58  ;;  %1150 = vmatmul.f32.gmra.mxu0 %v1092_v45 }
 0x5da   :  { %1177 = vmatmul.f32.gmra.mxu2 %v1101_v22  ;;  %1153 = vmatmul.f32.gmra.mxu0 %v1093_v3 }
 0x5e2   :  { %1180 = vmatmul.f32.gmra.mxu2 %v1102_v41  ;;  %1156 = vmatmul.f32.gmra.mxu0 %v1094_v12 }
 0x627   :  { %v1136_v5 = vpop.f32.mrf.mxu0 }
 0x62d   :  { %v1160_v46 = vpop.f32.mrf.mxu2 }
 0x62f   :  { %v1139_v2 = vpop.f32.mrf.mxu0 }
 0x635   :  { %v1163_v60 = vpop.f32.mrf.mxu2 }
 0x637   :  { %v1142_v33 = vpop.f32.mrf.mxu0 }
 0x63d   :  { %v1166_v19 = vpop.f32.mrf.mxu2 }
 0x63f   :  { %v1145_v37 = vpop.f32.mrf.mxu0 }
 0x645   :  { %v1169_v59 = vpop.f32.mrf.mxu2 }
 0x647   :  { %v1148_v51 = vpop.f32.mrf.mxu0 }
 0x64d   :  { %v1172_v24 = vpop.f32.mrf.mxu2 }
 0x64f   :  { %v1151_v55 = vpop.f32.mrf.mxu0 }
 0x655   :  { %v1175_v40 = vpop.f32.mrf.mxu2 }
 0x657   :  { %v1154_v7 = vpop.f32.mrf.mxu0 }
 0x65d   :  { %v1178_v39 = vpop.f32.mrf.mxu2 }
 0x65f   :  { %v1157_v63 = vpop.f32.mrf.mxu0 }
 0x665   :  { %v1181_v11 = vpop.f32.mrf.mxu2 }
 0x666   :  { %1188 = vmatpush.msra.mxu1 %v1181_v11  ;;  %1465 = vmatpush.msra.mxu3 %v1181_v11 }
 0x668   :  { %1189 = vmatpush.msra.mxu1 %v1178_v39  ;;  %1466 = vmatpush.msra.mxu3 %v1178_v39 }
 0x66a   :  { %1190 = vmatpush.msra.mxu1 %v1175_v40  ;;  %1467 = vmatpush.msra.mxu3 %v1175_v40 }
 0x66c   :  { %1191 = vmatpush.msra.mxu1 %v1172_v24  ;;  %1468 = vmatpush.msra.mxu3 %v1172_v24 }
 0x66e   :  { %1192 = vmatpush.msra.mxu1 %v1169_v59  ;;  %1469 = vmatpush.msra.mxu3 %v1169_v59 }
 0x670   :  { %1193 = vmatpush.msra.mxu1 %v1166_v19  ;;  %1470 = vmatpush.msra.mxu3 %v1166_v19 }
 0x672   :  { %1194 = vmatpush.msra.mxu1 %v1163_v60  ;;  %1471 = vmatpush.msra.mxu3 %v1163_v60 }
 0x674   :  { %1195 = vmatpush.msra.mxu1 %v1160_v46  ;;  %1472 = vmatpush.msra.mxu3 %v1160_v46 }
 0x676   :  { %1196 = vmatpush.msra.mxu1 %v1157_v63  ;;  %1473 = vmatpush.msra.mxu3 %v1157_v63 }
 0x678   :  { %1197 = vmatpush.msra.mxu1 %v1154_v7  ;;  %1474 = vmatpush.msra.mxu3 %v1154_v7 }
 0x67a   :  { %1198 = vmatpush.msra.mxu1 %v1151_v55  ;;  %1475 = vmatpush.msra.mxu3 %v1151_v55 }
 0x67c   :  { %1199 = vmatpush.msra.mxu1 %v1148_v51  ;;  %1476 = vmatpush.msra.mxu3 %v1148_v51 }
 0x67e   :  { %1200 = vmatpush.msra.mxu1 %v1145_v37  ;;  %1477 = vmatpush.msra.mxu3 %v1145_v37 }
 0x680   :  { %1201 = vmatpush.msra.mxu1 %v1142_v33  ;;  %1478 = vmatpush.msra.mxu3 %v1142_v33 }
 0x682   :  { %1202 = vmatpush.msra.mxu1 %v1139_v2  ;;  %1479 = vmatpush.msra.mxu3 %v1139_v2 }
 0x684   :  { %1203 = vmatpush.msra.mxu1 %v1136_v5  ;;  %1480 = vmatpush.msra.mxu3 %v1136_v5 }
 0x685   :  { %1228 = vmatmul.f32.vlgmr.msra.gmra.mxu3 %v2954_v29  ;;  %1204 = vmatmul.f32.vlgmr.msra.gmra.mxu1 %v2955_v32 }
 0x68d   :  { %1231 = vmatmul.f32.gmra.mxu3 %v2956_v20  ;;  %1207 = vmatmul.f32.gmra.mxu1 %v2957_v62 }
 0x695   :  { %1234 = vmatmul.f32.gmra.mxu3 %v2958_v28  ;;  %1210 = vmatmul.f32.gmra.mxu1 %v2959_v30 }
 0x69d   :  { %1237 = vmatmul.f32.gmra.mxu3 %v2960_v50  ;;  %1213 = vmatmul.f32.gmra.mxu1 %v2961_v42 }
 0x6a5   :  { %1240 = vmatmul.f32.gmra.mxu3 %v2962_v1  ;;  %1216 = vmatmul.f32.gmra.mxu1 %v2963_v48 }
 0x6ad   :  { %1243 = vmatmul.f32.gmra.mxu3 %v2964_v27  ;;  %1219 = vmatmul.f32.gmra.mxu1 %v2965_v54 }
 0x6b5   :  { %1246 = vmatmul.f32.gmra.mxu3 %v2966_v21  ;;  %1222 = vmatmul.f32.gmra.mxu1 %v2967_v36 }
 0x6bd   :  { %1249 = vmatmul.f32.gmra.mxu3 %v2968_v47  ;;  %1225 = vmatmul.f32.gmra.mxu1 %v2969_v57 }
 0x702   :  { %v1205_v26 = vpop.f32.mrf.mxu1 }
 0x703   :  { %v1206_v49 = vadd.f32 %v1629_v31, %v1205_v26 }
 0x705   :  { %1253 = vst [vmem:[#allocation10] sm:$0xff] %v1206_v49 }
 0x708   :  { %v1229_v61 = vpop.f32.mrf.mxu3 }
 0x709   :  { %v1230_v10 = vadd.f32 %v1629_v31, %v1229_v61 }
 0x70a   :  { %v1208_v23 = vpop.f32.mrf.mxu1 }
 0x70b   :  { %1261 = vst [vmem:[#allocation10 + $0x40] sm:$0xff] %v1230_v10  ;;  %v1209_v9 = vadd.f32 %v1629_v31, %v1208_v23 }
 0x70d   :  { %1254 = vst [vmem:[#allocation10 + $0x8] sm:$0xff] %v1209_v9 }
 0x710   :  { %v1232_v0 = vpop.f32.mrf.mxu3 }
 0x711   :  { %v1233_v8 = vadd.f32 %v1629_v31, %v1232_v0 }
 0x712   :  { %v1211_v38 = vpop.f32.mrf.mxu1 }
 0x713   :  { %1262 = vst [vmem:[#allocation10 + $0x48] sm:$0xff] %v1233_v8  ;;  %v1212_v25 = vadd.f32 %v1629_v31, %v1211_v38 }
 0x715   :  { %1255 = vst [vmem:[#allocation10 + $0x10] sm:$0xff] %v1212_v25 }
 0x718   :  { %v1235_v18 = vpop.f32.mrf.mxu3 }
 0x719   :  { %v1236_v56 = vadd.f32 %v1629_v31, %v1235_v18 }
 0x71a   :  { %v1214_v13 = vpop.f32.mrf.mxu1 }
 0x71b   :  { %1263 = vst [vmem:[#allocation10 + $0x50] sm:$0xff] %v1236_v56  ;;  %v1215_v6 = vadd.f32 %v1629_v31, %v1214_v13 }
 0x71d   :  { %1256 = vst [vmem:[#allocation10 + $0x18] sm:$0xff] %v1215_v6 }
 0x720   :  { %v1238_v52 = vpop.f32.mrf.mxu3 }
 0x721   :  { %v1239_v16 = vadd.f32 %v1629_v31, %v1238_v52 }
 0x722   :  { %v1217_v44 = vpop.f32.mrf.mxu1 }
 0x723   :  { %1264 = vst [vmem:[#allocation10 + $0x58] sm:$0xff] %v1239_v16  ;;  %v1218_v35 = vadd.f32 %v1629_v31, %v1217_v44 }
 0x725   :  { %1257 = vst [vmem:[#allocation10 + $0x20] sm:$0xff] %v1218_v35 }
 0x728   :  { %v1241_v15 = vpop.f32.mrf.mxu3 }
 0x729   :  { %v1242_v34 = vadd.f32 %v1629_v31, %v1241_v15 }
 0x72a   :  { %v1220_v4 = vpop.f32.mrf.mxu1 }
 0x72b   :  { %1265 = vst [vmem:[#allocation10 + $0x60] sm:$0xff] %v1242_v34  ;;  %v1221_v58 = vadd.f32 %v1629_v31, %v1220_v4 }
 0x72d   :  { %1258 = vst [vmem:[#allocation10 + $0x28] sm:$0xff] %v1221_v58 }
 0x730   :  { %v1244_v45 = vpop.f32.mrf.mxu3 }
 0x731   :  { %v1245_v53 = vadd.f32 %v1629_v31, %v1244_v45 }
 0x732   :  { %v1223_v22 = vpop.f32.mrf.mxu1 }
 0x733   :  { %1266 = vst [vmem:[#allocation10 + $0x68] sm:$0xff] %v1245_v53  ;;  %v1224_v43 = vadd.f32 %v1629_v31, %v1223_v22 }
 0x735   :  { %1259 = vst [vmem:[#allocation10 + $0x30] sm:$0xff] %v1224_v43 }
 0x738   :  { %v1247_v3 = vpop.f32.mrf.mxu3 }
 0x739   :  { %v1248_v17 = vadd.f32 %v1629_v31, %v1247_v3 }
 0x73a   :  { %v1226_v41 = vpop.f32.mrf.mxu1 }
 0x73b   :  { %1267 = vst [vmem:[#allocation10 + $0x70] sm:$0xff] %v1248_v17  ;;  %v1227_v14 = vadd.f32 %v1629_v31, %v1226_v41 }
 0x73d   :  { %1260 = vst [vmem:[#allocation10 + $0x38] sm:$0xff] %v1227_v14 }
 0x740   :  { %v1250_v12 = vpop.f32.mrf.mxu3 }
 0x741   :  { %v1251_v46 = vadd.f32 %v1629_v31, %v1250_v12 }
 0x743   :  { %1268 = vst [vmem:[#allocation10 + $0x78] sm:$0xff] %v1251_v46 }
 0x744   :  { %1281 = dma.vmem_to_hbm [thread:$0]  %s1274_s12, 2048, %s1276_s2, [#allocation6], %s1871_s9, %s1871_s9, %s1872_s10  }
 0x745   :  { %1800 = dma.done.wait [#allocation6], 2048  }
 0x746   :  { %1801 = vsyncadd [#allocation6], 4294965248 }
 0x747   :  { %1286 = vsyncpa [#allocation5], 1 }
 0x748   :  { %1287 = vsyncpa [#allocation8], 1 }
 0x749   :  { %1288 = vsyncpa [#allocation6], 1 }
 0x74a   :  { %1289 = vsyncmov [#allocation3] }
 0x74d   :  { %s1290_s1 = vpop.sfrf %1289 }
 0x74e   :  { %p1368_p1 = scmp.ne.s32.totalorder %s1290_s1, 0 }
 0x750   :  { %1294 = shalt.err (%p1368_p1)  }

</bundles_post_ra>
